<compile_context>
chip_gen: v7x
topology: tpu7x:2x2x1
jax: 0.10.0
libtpu: 0.0.40
codegen_flags: <defaults>
</compile_context>

<pallas_src>
import math
import jax
import jax.numpy as jnp
from jax.experimental import pallas as pl
from jax.experimental.pallas import tpu as pltpu


# ------------------------- fused GCN + LSTM kernel -------------------------

def make_fused_kernel(T, B, H, layers):
    """Fused GCN + stacked-LSTM forward (wavefront recurrence).

    Ref order: a_bd, x, gcn_w, gcn_b,
               w_ih0, w_hh0, b0, h0_0, c0_0,
               [w_cat_l, b_l, h0_l, c0_l]  for l = 1..layers-1,
               out_ref, gx0_scratch.
    """
    n_in = 9 + 4 * (layers - 1)

    def kernel(*refs):
        a_ref, x_ref, gw_ref, gb_ref = refs[:4]
        w_ih0_ref, w_hh0_ref, b0_ref, h00_ref, c00_ref = refs[4:9]
        layer_refs = refs[9:n_in]
        out_ref = refs[n_in]
        gx0_ref = refs[n_in + 1]          # VMEM scratch (T*B, 4H) f32

        bf16 = jnp.bfloat16

        # ---- GCN, all sequence steps at once: relu(A_blockdiag @ (X @ W) + b)
        # bf16 operands, f32 accumulation.
        support = jnp.dot(x_ref[...], gw_ref[...],
                          preferred_element_type=jnp.float32)          # (T*B, H)
        agg = jnp.dot(a_ref[...], support.astype(bf16),
                      preferred_element_type=jnp.float32)               # (T*B, H)
        x_gcn = jnp.maximum(agg + gb_ref[...], 0.0)                     # f32

        # ---- Layer-0 input projection for ALL timesteps, off the serial path,
        #      materialized into VMEM scratch (one vreg loaded per step below).
        gx0_ref[...] = jnp.dot(x_gcn.astype(bf16), w_ih0_ref[...],
                               preferred_element_type=jnp.float32) + b0_ref[...]

        whh0 = w_hh0_ref[...]                                           # (H, 4H) bf16
        w_cats = [layer_refs[4 * (l - 1) + 0][...] for l in range(1, layers)]
        b_ls = [layer_refs[4 * (l - 1) + 1][...] for l in range(1, layers)]

        h = [h00_ref[...]] + [layer_refs[4 * (l - 1) + 2][...] for l in range(1, layers)]
        c = [c00_ref[...]] + [layer_refs[4 * (l - 1) + 3][...] for l in range(1, layers)]

        # xin[l] = hidden output of layer l-1 at the timestep layer l runs next.
        xin = [None] * layers

        # ---- wavefront over (layer, time): slice s handles layer l at t = s-l.
        # Within a slice the per-layer matmuls are independent -> MXU overlap.
        for s in range(T + layers - 1):
            nxt = list(xin)
            for l in range(layers):
                t = s - l
                if not (0 <= t < T):
                    continue
                if l == 0:
                    # hoisted input projection + serial hidden projection
                    g = gx0_ref[pl.ds(t * B, B), :] + jnp.dot(
                        h[0].astype(bf16), whh0,
                        preferred_element_type=jnp.float32)             # (B, 4H)
                else:
                    # fused [x_in, h] @ [W_ih; W_hh] : one matmul per step
                    cat = jnp.concatenate([xin[l], h[l]], axis=-1).astype(bf16)
                    g = jnp.dot(cat, w_cats[l - 1],
                                preferred_element_type=jnp.float32) + b_ls[l - 1]

                # PyTorch gate order (i, f, g, o); full-width EUP passes then
                # direct single slices (f32 elementwise path).
                sg = jax.nn.sigmoid(g)
                tg = jnp.tanh(g)
                i_g = sg[:, 0:H]
                f_g = sg[:, H:2 * H]
                g_g = tg[:, 2 * H:3 * H]
                o_g = sg[:, 3 * H:4 * H]

                c[l] = f_g * c[l] + i_g * g_g
                h[l] = o_g * jnp.tanh(c[l])

                if l == layers - 1:
                    out_ref[pl.ds(t * B, B), :] = h[l]
                else:
                    nxt[l + 1] = h[l]
            xin = nxt

    return kernel


# ------------------------------ wrapper -------------------------------------

def lstm_gcn_net_forward(params, adjacencies, xs, batch_size, output_dims):
    S, N, _ = adjacencies.shape
    I = xs.shape[-1]
    H = output_dims
    B = batch_size
    layers = len(params["lstm"])

    # The reference module implicitly requires these; fail loudly instead of
    # producing a confusing dot-shape error.
    assert I == H, "LstmGcnNet forward requires input_dims == output_dims"
    assert (S * N) % B == 0, "seq_num * num_nodes must be divisible by batch_size"
    T = (S * N) // B

    # Block-diagonal adjacency -> single (S*N, S*N)@(S*N, H) matmul in-kernel.
    # Only valid while it is small; guard the VMEM footprint explicitly.
    assert (S * N) ** 2 * 2 <= 8 * 1024 * 1024, (
        "dense block-diagonal adjacency too large for VMEM; "
        "switch to a gridded per-step A @ support formulation")
    eye = jnp.eye(S, dtype=jnp.float32)
    a_bd = (eye[:, None, :, None] * adjacencies[:, :, None, :]
            ).reshape(S * N, S * N).astype(jnp.bfloat16)
    x_flat = xs.reshape(S * N, I).astype(jnp.bfloat16)

    bf16 = jnp.bfloat16
    lp0 = params["lstm"][0]
    args = [a_bd, x_flat,
            params["gcn_w"].astype(bf16), params["gcn_b"],
            lp0["w_ih_t"].astype(bf16), lp0["w_hh_t"].astype(bf16), lp0["bias2d"],
            params["h0"][0], params["c0"][0]]
    for l in range(1, layers):
        lp = params["lstm"][l]
        # Stack [W_ih; W_hh] once so layers>0 do one matmul per timestep.
        w_cat = jnp.concatenate([lp["w_ih_t"], lp["w_hh_t"]], axis=0).astype(bf16)
        args += [w_cat, lp["bias2d"], params["h0"][l], params["c0"][l]]

    vmem = pl.BlockSpec(memory_space=pltpu.MemorySpace.VMEM)
    out_flat = pl.pallas_call(
        make_fused_kernel(T, B, H, layers),
        out_shape=jax.ShapeDtypeStruct((T * B, H), jnp.float32),
        in_specs=[vmem] * len(args),
        out_specs=vmem,
        scratch_shapes=[pltpu.VMEM((T * B, 4 * H), jnp.float32)],
    )(*args)

    # torch: per-step .view(-1, batch, out) + cat(dim=0)  ==  this flat reshape
    return out_flat.reshape(T, B, H)


# ------------------------------- params -------------------------------------

def init_params(key, input_dims, hidden_dims, output_dims, batch_size, layers):
    del hidden_dims  # stored by the reference module but unused in its forward
    H = output_dims
    keys = jax.random.split(key, 1 + 4 * layers + 2)
    ki = iter(keys)

    # GraphConvolution: weight (I, O) kaiming-uniform (torch fan_in of a 2D
    # (I, O) tensor = O), bias zeros.
    bound = math.sqrt(2.0) * math.sqrt(3.0 / output_dims)
    gcn_w = jax.random.uniform(next(ki), (input_dims, output_dims),
                               jnp.float32, -bound, bound)
    gcn_b = jnp.zeros((1, output_dims), jnp.float32)

    # nn.LSTM(input_dims, output_dims, layers): uniform(-1/sqrt(H), 1/sqrt(H)).
    # Gate columns kept in PyTorch order (i, f, g, o); the kernel applies
    # full-width sigmoid/tanh and slices each gate directly.
    k_unif = 1.0 / math.sqrt(H)
    lstm_layers = []
    for l in range(layers):
        in_dim = input_dims if l == 0 else H
        w_ih = jax.random.uniform(next(ki), (4 * H, in_dim), jnp.float32, -k_unif, k_unif)
        w_hh = jax.random.uniform(next(ki), (4 * H, H), jnp.float32, -k_unif, k_unif)
        b_ih = jax.random.uniform(next(ki), (4 * H,), jnp.float32, -k_unif, k_unif)
        b_hh = jax.random.uniform(next(ki), (4 * H,), jnp.float32, -k_unif, k_unif)
        lstm_layers.append({
            "w_ih_t": w_ih.T,                           # (in_dim, 4H)
            "w_hh_t": w_hh.T,                           # (H, 4H)
            "bias2d": (b_ih + b_hh).reshape(1, 4 * H),  # (1, 4H)
        })

    # h0 / c0 (torch.randn per forward in the reference; fixed deterministic here)
    h0 = jax.random.normal(next(ki), (layers, batch_size, H), jnp.float32)
    c0 = jax.random.normal(next(ki), (layers, batch_size, H), jnp.float32)

    return {"gcn_w": gcn_w, "gcn_b": gcn_b, "lstm": lstm_layers,
            "h0": h0, "c0": c0}


# -------------------------------- main ---------------------------------------

if __name__ == "__main__":
    # Forward requires input_dims == output_dims (LSTM accepts GCN output) and
    # N nodes == batch_size for the reference .view to be the identity split.
    seq_num = 8
    input_dims = 32
    hidden_dims = 32      # unused by the forward path (stored only)
    output_dims = 32
    batch_size = 8        # == number of graph nodes N
    layers = 2
    N = batch_size

    key = jax.random.PRNGKey(0)
    k_par, k_adj, k_x = jax.random.split(key, 3)

    params = init_params(k_par, input_dims, hidden_dims, output_dims,
                         batch_size, layers)

    adjacencies = jax.random.uniform(k_adj, (seq_num, N, N), jnp.float32)
    xs = jax.random.normal(k_x, (seq_num, N, input_dims), jnp.float32)

    out = lstm_gcn_net_forward(params, adjacencies, xs, batch_size, output_dims)
    out = jax.block_until_ready(out)

    expected_T = seq_num * N // batch_size
    assert out.shape == (expected_T, batch_size, output_dims), out.shape
    assert out.dtype == jnp.float32
    assert bool(jnp.all(jnp.isfinite(out)))
    print("KERNEL_OK")
</pallas_src>

<mosaic_0001>
module attributes {stable_mosaic.version = 11 : i64} {
  func.func @kernel(%arg0: memref<64x64xbf16, #tpu.memory_space<vmem>>, %arg1: memref<64x32xbf16, #tpu.memory_space<vmem>>, %arg2: memref<32x32xbf16, #tpu.memory_space<vmem>>, %arg3: memref<1x32xf32, #tpu.memory_space<vmem>>, %arg4: memref<32x128xbf16, #tpu.memory_space<vmem>>, %arg5: memref<32x128xbf16, #tpu.memory_space<vmem>>, %arg6: memref<1x128xf32, #tpu.memory_space<vmem>>, %arg7: memref<8x32xf32, #tpu.memory_space<vmem>>, %arg8: memref<8x32xf32, #tpu.memory_space<vmem>>, %arg9: memref<64x128xbf16, #tpu.memory_space<vmem>>, %arg10: memref<1x128xf32, #tpu.memory_space<vmem>>, %arg11: memref<8x32xf32, #tpu.memory_space<vmem>>, %arg12: memref<8x32xf32, #tpu.memory_space<vmem>>, %arg13: memref<64x32xf32, #tpu.memory_space<vmem>>, %arg14: memref<64x128xf32, #tpu.memory_space<vmem>>) attributes {dimension_semantics = [], scalar_prefetch = 0 : i64, scratch_operands = 1 : i64, tpu.core_type = #tpu.core_type<tc>} {
    %c0 = arith.constant 0 : index
    %c0_0 = arith.constant 0 : index
    %0 = vector.load %arg1[%c0, %c0_0] : memref<64x32xbf16, #tpu.memory_space<vmem>>, vector<64x32xbf16>
    %c0_1 = arith.constant 0 : index
    %c0_2 = arith.constant 0 : index
    %1 = vector.load %arg2[%c0_1, %c0_2] : memref<32x32xbf16, #tpu.memory_space<vmem>>, vector<32x32xbf16>
    %cst = arith.constant dense<0.000000e+00> : vector<64x32xf32>
    %2 = tpu.matmul %0, %1, %cst {dimension_numbers = #tpu.dot_dimension_numbers<[1], [0], [0], [1], [0, 0, 1, 1], [], []>} : vector<64x32xbf16>, vector<32x32xbf16>, vector<64x32xf32> -> vector<64x32xf32>
    %c0_3 = arith.constant 0 : index
    %c0_4 = arith.constant 0 : index
    %3 = vector.load %arg0[%c0_3, %c0_4] : memref<64x64xbf16, #tpu.memory_space<vmem>>, vector<64x64xbf16>
    %4 = arith.truncf %2 : vector<64x32xf32> to vector<64x32xbf16>
    %cst_5 = arith.constant dense<0.000000e+00> : vector<64x32xf32>
    %5 = tpu.matmul %3, %4, %cst_5 {dimension_numbers = #tpu.dot_dimension_numbers<[1], [0], [0], [1], [0, 0, 1, 1], [], []>} : vector<64x64xbf16>, vector<64x32xbf16>, vector<64x32xf32> -> vector<64x32xf32>
    %c0_6 = arith.constant 0 : index
    %c0_7 = arith.constant 0 : index
    %6 = vector.load %arg3[%c0_6, %c0_7] : memref<1x32xf32, #tpu.memory_space<vmem>>, vector<1x32xf32>
    %7 = vector.broadcast %6 : vector<1x32xf32> to vector<64x32xf32>
    %8 = arith.addf %5, %7 : vector<64x32xf32>
    %cst_8 = arith.constant 0.000000e+00 : f32
    %9 = vector.broadcast %cst_8 : f32 to vector<64x32xf32>
    %10 = arith.maximumf %8, %9 : vector<64x32xf32>
    %11 = arith.truncf %10 : vector<64x32xf32> to vector<64x32xbf16>
    %c0_9 = arith.constant 0 : index
    %c0_10 = arith.constant 0 : index
    %12 = vector.load %arg4[%c0_9, %c0_10] : memref<32x128xbf16, #tpu.memory_space<vmem>>, vector<32x128xbf16>
    %cst_11 = arith.constant dense<0.000000e+00> : vector<64x128xf32>
    %13 = tpu.matmul %11, %12, %cst_11 {dimension_numbers = #tpu.dot_dimension_numbers<[1], [0], [0], [1], [0, 0, 1, 1], [], []>} : vector<64x32xbf16>, vector<32x128xbf16>, vector<64x128xf32> -> vector<64x128xf32>
    %c0_12 = arith.constant 0 : index
    %c0_13 = arith.constant 0 : index
    %14 = vector.load %arg6[%c0_12, %c0_13] : memref<1x128xf32, #tpu.memory_space<vmem>>, vector<1x128xf32>
    %15 = vector.broadcast %14 : vector<1x128xf32> to vector<64x128xf32>
    %16 = arith.addf %13, %15 : vector<64x128xf32>
    %c0_14 = arith.constant 0 : index
    %c0_15 = arith.constant 0 : index
    %17 = vector.load %arg14[%c0_14, %c0_15] : memref<64x128xf32, #tpu.memory_space<vmem>>, vector<64x128xf32>
    tpu.vector_store %arg14[%c0_14, %c0_15], %16 {strides = array<i32>} : memref<64x128xf32, #tpu.memory_space<vmem>>, vector<64x128xf32>,
    %c0_16 = arith.constant 0 : index
    %c0_17 = arith.constant 0 : index
    %18 = vector.load %arg5[%c0_16, %c0_17] : memref<32x128xbf16, #tpu.memory_space<vmem>>, vector<32x128xbf16>
    %c0_18 = arith.constant 0 : index
    %c0_19 = arith.constant 0 : index
    %19 = vector.load %arg9[%c0_18, %c0_19] : memref<64x128xbf16, #tpu.memory_space<vmem>>, vector<64x128xbf16>
    %c0_20 = arith.constant 0 : index
    %c0_21 = arith.constant 0 : index
    %20 = vector.load %arg10[%c0_20, %c0_21] : memref<1x128xf32, #tpu.memory_space<vmem>>, vector<1x128xf32>
    %c0_22 = arith.constant 0 : index
    %c0_23 = arith.constant 0 : index
    %21 = vector.load %arg7[%c0_22, %c0_23] : memref<8x32xf32, #tpu.memory_space<vmem>>, vector<8x32xf32>
    %c0_24 = arith.constant 0 : index
    %c0_25 = arith.constant 0 : index
    %22 = vector.load %arg11[%c0_24, %c0_25] : memref<8x32xf32, #tpu.memory_space<vmem>>, vector<8x32xf32>
    %c0_26 = arith.constant 0 : index
    %c0_27 = arith.constant 0 : index
    %23 = vector.load %arg8[%c0_26, %c0_27] : memref<8x32xf32, #tpu.memory_space<vmem>>, vector<8x32xf32>
    %c0_28 = arith.constant 0 : index
    %c0_29 = arith.constant 0 : index
    %24 = vector.load %arg12[%c0_28, %c0_29] : memref<8x32xf32, #tpu.memory_space<vmem>>, vector<8x32xf32>
    %c0_30 = arith.constant 0 : index
    %c0_31 = arith.constant 0 : index
    %25 = vector.load %arg14[%c0_30, %c0_31] : memref<64x128xf32, #tpu.memory_space<vmem>>, vector<8x128xf32>
    %26 = arith.truncf %21 : vector<8x32xf32> to vector<8x32xbf16>
    %cst_32 = arith.constant dense<0.000000e+00> : vector<8x128xf32>
    %27 = tpu.matmul %26, %18, %cst_32 {dimension_numbers = #tpu.dot_dimension_numbers<[1], [0], [0], [1], [0, 0, 1, 1], [], []>} : vector<8x32xbf16>, vector<32x128xbf16>, vector<8x128xf32> -> vector<8x128xf32>
    %28 = arith.addf %25, %27 : vector<8x128xf32>
    %29 = arith.negf %28 : vector<8x128xf32>
    %30 = math.exp %29 : vector<8x128xf32>
    %cst_33 = arith.constant 1.000000e+00 : f32
    %31 = vector.broadcast %cst_33 : f32 to vector<8x128xf32>
    %32 = arith.addf %31, %30 : vector<8x128xf32>
    %33 = arith.divf %31, %32 : vector<8x128xf32>
    %34 = math.tanh %28 : vector<8x128xf32>
    %35 = vector.extract_strided_slice %33 {offsets = [0, 0], sizes = [8, 32], strides = [1, 1]} : vector<8x128xf32> to vector<8x32xf32>
    %36 = vector.extract_strided_slice %33 {offsets = [0, 32], sizes = [8, 32], strides = [1, 1]} : vector<8x128xf32> to vector<8x32xf32>
    %37 = vector.extract_strided_slice %34 {offsets = [0, 64], sizes = [8, 32], strides = [1, 1]} : vector<8x128xf32> to vector<8x32xf32>
    %38 = vector.extract_strided_slice %33 {offsets = [0, 96], sizes = [8, 32], strides = [1, 1]} : vector<8x128xf32> to vector<8x32xf32>
    %39 = arith.mulf %36, %23 : vector<8x32xf32>
    %40 = arith.mulf %35, %37 : vector<8x32xf32>
    %41 = arith.addf %39, %40 : vector<8x32xf32>
    %42 = math.tanh %41 : vector<8x32xf32>
    %43 = arith.mulf %38, %42 : vector<8x32xf32>
    %c8 = arith.constant 8 : index
    %c0_34 = arith.constant 0 : index
    %44 = vector.load %arg14[%c8, %c0_34] : memref<64x128xf32, #tpu.memory_space<vmem>>, vector<8x128xf32>
    %45 = arith.truncf %43 : vector<8x32xf32> to vector<8x32xbf16>
    %cst_35 = arith.constant dense<0.000000e+00> : vector<8x128xf32>
    %46 = tpu.matmul %45, %18, %cst_35 {dimension_numbers = #tpu.dot_dimension_numbers<[1], [0], [0], [1], [0, 0, 1, 1], [], []>} : vector<8x32xbf16>, vector<32x128xbf16>, vector<8x128xf32> -> vector<8x128xf32>
    %47 = arith.addf %44, %46 : vector<8x128xf32>
    %48 = arith.negf %47 : vector<8x128xf32>
    %49 = math.exp %48 : vector<8x128xf32>
    %cst_36 = arith.constant 1.000000e+00 : f32
    %50 = vector.broadcast %cst_36 : f32 to vector<8x128xf32>
    %51 = arith.addf %50, %49 : vector<8x128xf32>
    %52 = arith.divf %50, %51 : vector<8x128xf32>
    %53 = math.tanh %47 : vector<8x128xf32>
    %54 = vector.extract_strided_slice %52 {offsets = [0, 0], sizes = [8, 32], strides = [1, 1]} : vector<8x128xf32> to vector<8x32xf32>
    %55 = vector.extract_strided_slice %52 {offsets = [0, 32], sizes = [8, 32], strides = [1, 1]} : vector<8x128xf32> to vector<8x32xf32>
    %56 = vector.extract_strided_slice %53 {offsets = [0, 64], sizes = [8, 32], strides = [1, 1]} : vector<8x128xf32> to vector<8x32xf32>
    %57 = vector.extract_strided_slice %52 {offsets = [0, 96], sizes = [8, 32], strides = [1, 1]} : vector<8x128xf32> to vector<8x32xf32>
    %58 = arith.mulf %55, %41 : vector<8x32xf32>
    %59 = arith.mulf %54, %56 : vector<8x32xf32>
    %60 = arith.addf %58, %59 : vector<8x32xf32>
    %61 = math.tanh %60 : vector<8x32xf32>
    %62 = arith.mulf %57, %61 : vector<8x32xf32>
    %63 = tpu.concatenate %43, %22 in 1 : vector<8x32xf32>, vector<8x32xf32> -> vector<8x64xf32>
    %64 = arith.truncf %63 : vector<8x64xf32> to vector<8x64xbf16>
    %cst_37 = arith.constant dense<0.000000e+00> : vector<8x128xf32>
    %65 = tpu.matmul %64, %19, %cst_37 {dimension_numbers = #tpu.dot_dimension_numbers<[1], [0], [0], [1], [0, 0, 1, 1], [], []>} : vector<8x64xbf16>, vector<64x128xbf16>, vector<8x128xf32> -> vector<8x128xf32>
    %66 = vector.broadcast %20 : vector<1x128xf32> to vector<8x128xf32>
    %67 = arith.addf %65, %66 : vector<8x128xf32>
    %68 = arith.negf %67 : vector<8x128xf32>
    %69 = math.exp %68 : vector<8x128xf32>
    %cst_38 = arith.constant 1.000000e+00 : f32
    %70 = vector.broadcast %cst_38 : f32 to vector<8x128xf32>
    %71 = arith.addf %70, %69 : vector<8x128xf32>
    %72 = arith.divf %70, %71 : vector<8x128xf32>
    %73 = math.tanh %67 : vector<8x128xf32>
    %74 = vector.extract_strided_slice %72 {offsets = [0, 0], sizes = [8, 32], strides = [1, 1]} : vector<8x128xf32> to vector<8x32xf32>
    %75 = vector.extract_strided_slice %72 {offsets = [0, 32], sizes = [8, 32], strides = [1, 1]} : vector<8x128xf32> to vector<8x32xf32>
    %76 = vector.extract_strided_slice %73 {offsets = [0, 64], sizes = [8, 32], strides = [1, 1]} : vector<8x128xf32> to vector<8x32xf32>
    %77 = vector.extract_strided_slice %72 {offsets = [0, 96], sizes = [8, 32], strides = [1, 1]} : vector<8x128xf32> to vector<8x32xf32>
    %78 = arith.mulf %75, %24 : vector<8x32xf32>
    %79 = arith.mulf %74, %76 : vector<8x32xf32>
    %80 = arith.addf %78, %79 : vector<8x32xf32>
    %81 = math.tanh %80 : vector<8x32xf32>
    %82 = arith.mulf %77, %81 : vector<8x32xf32>
    %c0_39 = arith.constant 0 : index
    %c0_40 = arith.constant 0 : index
    %83 = vector.load %arg13[%c0_39, %c0_40] : memref<64x32xf32, #tpu.memory_space<vmem>>, vector<8x32xf32>
    tpu.vector_store %arg13[%c0_39, %c0_40], %82 {strides = array<i32>} : memref<64x32xf32, #tpu.memory_space<vmem>>, vector<8x32xf32>,
    %c16 = arith.constant 16 : index
    %c0_41 = arith.constant 0 : index
    %84 = vector.load %arg14[%c16, %c0_41] : memref<64x128xf32, #tpu.memory_space<vmem>>, vector<8x128xf32>
    %85 = arith.truncf %62 : vector<8x32xf32> to vector<8x32xbf16>
    %cst_42 = arith.constant dense<0.000000e+00> : vector<8x128xf32>
    %86 = tpu.matmul %85, %18, %cst_42 {dimension_numbers = #tpu.dot_dimension_numbers<[1], [0], [0], [1], [0, 0, 1, 1], [], []>} : vector<8x32xbf16>, vector<32x128xbf16>, vector<8x128xf32> -> vector<8x128xf32>
    %87 = arith.addf %84, %86 : vector<8x128xf32>
    %88 = arith.negf %87 : vector<8x128xf32>
    %89 = math.exp %88 : vector<8x128xf32>
    %cst_43 = arith.constant 1.000000e+00 : f32
    %90 = vector.broadcast %cst_43 : f32 to vector<8x128xf32>
    %91 = arith.addf %90, %89 : vector<8x128xf32>
    %92 = arith.divf %90, %91 : vector<8x128xf32>
    %93 = math.tanh %87 : vector<8x128xf32>
    %94 = vector.extract_strided_slice %92 {offsets = [0, 0], sizes = [8, 32], strides = [1, 1]} : vector<8x128xf32> to vector<8x32xf32>
    %95 = vector.extract_strided_slice %92 {offsets = [0, 32], sizes = [8, 32], strides = [1, 1]} : vector<8x128xf32> to vector<8x32xf32>
    %96 = vector.extract_strided_slice %93 {offsets = [0, 64], sizes = [8, 32], strides = [1, 1]} : vector<8x128xf32> to vector<8x32xf32>
    %97 = vector.extract_strided_slice %92 {offsets = [0, 96], sizes = [8, 32], strides = [1, 1]} : vector<8x128xf32> to vector<8x32xf32>
    %98 = arith.mulf %95, %60 : vector<8x32xf32>
    %99 = arith.mulf %94, %96 : vector<8x32xf32>
    %100 = arith.addf %98, %99 : vector<8x32xf32>
    %101 = math.tanh %100 : vector<8x32xf32>
    %102 = arith.mulf %97, %101 : vector<8x32xf32>
    %103 = tpu.concatenate %62, %82 in 1 : vector<8x32xf32>, vector<8x32xf32> -> vector<8x64xf32>
    %104 = arith.truncf %103 : vector<8x64xf32> to vector<8x64xbf16>
    %cst_44 = arith.constant dense<0.000000e+00> : vector<8x128xf32>
    %105 = tpu.matmul %104, %19, %cst_44 {dimension_numbers = #tpu.dot_dimension_numbers<[1], [0], [0], [1], [0, 0, 1, 1], [], []>} : vector<8x64xbf16>, vector<64x128xbf16>, vector<8x128xf32> -> vector<8x128xf32>
    %106 = vector.broadcast %20 : vector<1x128xf32> to vector<8x128xf32>
    %107 = arith.addf %105, %106 : vector<8x128xf32>
    %108 = arith.negf %107 : vector<8x128xf32>
    %109 = math.exp %108 : vector<8x128xf32>
    %cst_45 = arith.constant 1.000000e+00 : f32
    %110 = vector.broadcast %cst_45 : f32 to vector<8x128xf32>
    %111 = arith.addf %110, %109 : vector<8x128xf32>
    %112 = arith.divf %110, %111 : vector<8x128xf32>
    %113 = math.tanh %107 : vector<8x128xf32>
    %114 = vector.extract_strided_slice %112 {offsets = [0, 0], sizes = [8, 32], strides = [1, 1]} : vector<8x128xf32> to vector<8x32xf32>
    %115 = vector.extract_strided_slice %112 {offsets = [0, 32], sizes = [8, 32], strides = [1, 1]} : vector<8x128xf32> to vector<8x32xf32>
    %116 = vector.extract_strided_slice %113 {offsets = [0, 64], sizes = [8, 32], strides = [1, 1]} : vector<8x128xf32> to vector<8x32xf32>
    %117 = vector.extract_strided_slice %112 {offsets = [0, 96], sizes = [8, 32], strides = [1, 1]} : vector<8x128xf32> to vector<8x32xf32>
    %118 = arith.mulf %115, %80 : vector<8x32xf32>
    %119 = arith.mulf %114, %116 : vector<8x32xf32>
    %120 = arith.addf %118, %119 : vector<8x32xf32>
    %121 = math.tanh %120 : vector<8x32xf32>
    %122 = arith.mulf %117, %121 : vector<8x32xf32>
    %c8_46 = arith.constant 8 : index
    %c0_47 = arith.constant 0 : index
    %123 = vector.load %arg13[%c8_46, %c0_47] : memref<64x32xf32, #tpu.memory_space<vmem>>, vector<8x32xf32>
    tpu.vector_store %arg13[%c8_46, %c0_47], %122 {strides = array<i32>} : memref<64x32xf32, #tpu.memory_space<vmem>>, vector<8x32xf32>,
    %c24 = arith.constant 24 : index
    %c0_48 = arith.constant 0 : index
    %124 = vector.load %arg14[%c24, %c0_48] : memref<64x128xf32, #tpu.memory_space<vmem>>, vector<8x128xf32>
    %125 = arith.truncf %102 : vector<8x32xf32> to vector<8x32xbf16>
    %cst_49 = arith.constant dense<0.000000e+00> : vector<8x128xf32>
    %126 = tpu.matmul %125, %18, %cst_49 {dimension_numbers = #tpu.dot_dimension_numbers<[1], [0], [0], [1], [0, 0, 1, 1], [], []>} : vector<8x32xbf16>, vector<32x128xbf16>, vector<8x128xf32> -> vector<8x128xf32>
    %127 = arith.addf %124, %126 : vector<8x128xf32>
    %128 = arith.negf %127 : vector<8x128xf32>
    %129 = math.exp %128 : vector<8x128xf32>
    %cst_50 = arith.constant 1.000000e+00 : f32
    %130 = vector.broadcast %cst_50 : f32 to vector<8x128xf32>
    %131 = arith.addf %130, %129 : vector<8x128xf32>
    %132 = arith.divf %130, %131 : vector<8x128xf32>
    %133 = math.tanh %127 : vector<8x128xf32>
    %134 = vector.extract_strided_slice %132 {offsets = [0, 0], sizes = [8, 32], strides = [1, 1]} : vector<8x128xf32> to vector<8x32xf32>
    %135 = vector.extract_strided_slice %132 {offsets = [0, 32], sizes = [8, 32], strides = [1, 1]} : vector<8x128xf32> to vector<8x32xf32>
    %136 = vector.extract_strided_slice %133 {offsets = [0, 64], sizes = [8, 32], strides = [1, 1]} : vector<8x128xf32> to vector<8x32xf32>
    %137 = vector.extract_strided_slice %132 {offsets = [0, 96], sizes = [8, 32], strides = [1, 1]} : vector<8x128xf32> to vector<8x32xf32>
    %138 = arith.mulf %135, %100 : vector<8x32xf32>
    %139 = arith.mulf %134, %136 : vector<8x32xf32>
    %140 = arith.addf %138, %139 : vector<8x32xf32>
    %141 = math.tanh %140 : vector<8x32xf32>
    %142 = arith.mulf %137, %141 : vector<8x32xf32>
    %143 = tpu.concatenate %102, %122 in 1 : vector<8x32xf32>, vector<8x32xf32> -> vector<8x64xf32>
    %144 = arith.truncf %143 : vector<8x64xf32> to vector<8x64xbf16>
    %cst_51 = arith.constant dense<0.000000e+00> : vector<8x128xf32>
    %145 = tpu.matmul %144, %19, %cst_51 {dimension_numbers = #tpu.dot_dimension_numbers<[1], [0], [0], [1], [0, 0, 1, 1], [], []>} : vector<8x64xbf16>, vector<64x128xbf16>, vector<8x128xf32> -> vector<8x128xf32>
    %146 = vector.broadcast %20 : vector<1x128xf32> to vector<8x128xf32>
    %147 = arith.addf %145, %146 : vector<8x128xf32>
    %148 = arith.negf %147 : vector<8x128xf32>
    %149 = math.exp %148 : vector<8x128xf32>
    %cst_52 = arith.constant 1.000000e+00 : f32
    %150 = vector.broadcast %cst_52 : f32 to vector<8x128xf32>
    %151 = arith.addf %150, %149 : vector<8x128xf32>
    %152 = arith.divf %150, %151 : vector<8x128xf32>
    %153 = math.tanh %147 : vector<8x128xf32>
    %154 = vector.extract_strided_slice %152 {offsets = [0, 0], sizes = [8, 32], strides = [1, 1]} : vector<8x128xf32> to vector<8x32xf32>
    %155 = vector.extract_strided_slice %152 {offsets = [0, 32], sizes = [8, 32], strides = [1, 1]} : vector<8x128xf32> to vector<8x32xf32>
    %156 = vector.extract_strided_slice %153 {offsets = [0, 64], sizes = [8, 32], strides = [1, 1]} : vector<8x128xf32> to vector<8x32xf32>
    %157 = vector.extract_strided_slice %152 {offsets = [0, 96], sizes = [8, 32], strides = [1, 1]} : vector<8x128xf32> to vector<8x32xf32>
    %158 = arith.mulf %155, %120 : vector<8x32xf32>
    %159 = arith.mulf %154, %156 : vector<8x32xf32>
    %160 = arith.addf %158, %159 : vector<8x32xf32>
    %161 = math.tanh %160 : vector<8x32xf32>
    %162 = arith.mulf %157, %161 : vector<8x32xf32>
    %c16_53 = arith.constant 16 : index
    %c0_54 = arith.constant 0 : index
    %163 = vector.load %arg13[%c16_53, %c0_54] : memref<64x32xf32, #tpu.memory_space<vmem>>, vector<8x32xf32>
    tpu.vector_store %arg13[%c16_53, %c0_54], %162 {strides = array<i32>} : memref<64x32xf32, #tpu.memory_space<vmem>>, vector<8x32xf32>,
    %c32 = arith.constant 32 : index
    %c0_55 = arith.constant 0 : index
    %164 = vector.load %arg14[%c32, %c0_55] : memref<64x128xf32, #tpu.memory_space<vmem>>, vector<8x128xf32>
    %165 = arith.truncf %142 : vector<8x32xf32> to vector<8x32xbf16>
    %cst_56 = arith.constant dense<0.000000e+00> : vector<8x128xf32>
    %166 = tpu.matmul %165, %18, %cst_56 {dimension_numbers = #tpu.dot_dimension_numbers<[1], [0], [0], [1], [0, 0, 1, 1], [], []>} : vector<8x32xbf16>, vector<32x128xbf16>, vector<8x128xf32> -> vector<8x128xf32>
    %167 = arith.addf %164, %166 : vector<8x128xf32>
    %168 = arith.negf %167 : vector<8x128xf32>
    %169 = math.exp %168 : vector<8x128xf32>
    %cst_57 = arith.constant 1.000000e+00 : f32
    %170 = vector.broadcast %cst_57 : f32 to vector<8x128xf32>
    %171 = arith.addf %170, %169 : vector<8x128xf32>
    %172 = arith.divf %170, %171 : vector<8x128xf32>
    %173 = math.tanh %167 : vector<8x128xf32>
    %174 = vector.extract_strided_slice %172 {offsets = [0, 0], sizes = [8, 32], strides = [1, 1]} : vector<8x128xf32> to vector<8x32xf32>
    %175 = vector.extract_strided_slice %172 {offsets = [0, 32], sizes = [8, 32], strides = [1, 1]} : vector<8x128xf32> to vector<8x32xf32>
    %176 = vector.extract_strided_slice %173 {offsets = [0, 64], sizes = [8, 32], strides = [1, 1]} : vector<8x128xf32> to vector<8x32xf32>
    %177 = vector.extract_strided_slice %172 {offsets = [0, 96], sizes = [8, 32], strides = [1, 1]} : vector<8x128xf32> to vector<8x32xf32>
    %178 = arith.mulf %175, %140 : vector<8x32xf32>
    %179 = arith.mulf %174, %176 : vector<8x32xf32>
    %180 = arith.addf %178, %179 : vector<8x32xf32>
    %181 = math.tanh %180 : vector<8x32xf32>
    %182 = arith.mulf %177, %181 : vector<8x32xf32>
    %183 = tpu.concatenate %142, %162 in 1 : vector<8x32xf32>, vector<8x32xf32> -> vector<8x64xf32>
    %184 = arith.truncf %183 : vector<8x64xf32> to vector<8x64xbf16>
    %cst_58 = arith.constant dense<0.000000e+00> : vector<8x128xf32>
    %185 = tpu.matmul %184, %19, %cst_58 {dimension_numbers = #tpu.dot_dimension_numbers<[1], [0], [0], [1], [0, 0, 1, 1], [], []>} : vector<8x64xbf16>, vector<64x128xbf16>, vector<8x128xf32> -> vector<8x128xf32>
    %186 = vector.broadcast %20 : vector<1x128xf32> to vector<8x128xf32>
    %187 = arith.addf %185, %186 : vector<8x128xf32>
    %188 = arith.negf %187 : vector<8x128xf32>
    %189 = math.exp %188 : vector<8x128xf32>
    %cst_59 = arith.constant 1.000000e+00 : f32
    %190 = vector.broadcast %cst_59 : f32 to vector<8x128xf32>
    %191 = arith.addf %190, %189 : vector<8x128xf32>
    %192 = arith.divf %190, %191 : vector<8x128xf32>
    %193 = math.tanh %187 : vector<8x128xf32>
    %194 = vector.extract_strided_slice %192 {offsets = [0, 0], sizes = [8, 32], strides = [1, 1]} : vector<8x128xf32> to vector<8x32xf32>
    %195 = vector.extract_strided_slice %192 {offsets = [0, 32], sizes = [8, 32], strides = [1, 1]} : vector<8x128xf32> to vector<8x32xf32>
    %196 = vector.extract_strided_slice %193 {offsets = [0, 64], sizes = [8, 32], strides = [1, 1]} : vector<8x128xf32> to vector<8x32xf32>
    %197 = vector.extract_strided_slice %192 {offsets = [0, 96], sizes = [8, 32], strides = [1, 1]} : vector<8x128xf32> to vector<8x32xf32>
    %198 = arith.mulf %195, %160 : vector<8x32xf32>
    %199 = arith.mulf %194, %196 : vector<8x32xf32>
    %200 = arith.addf %198, %199 : vector<8x32xf32>
    %201 = math.tanh %200 : vector<8x32xf32>
    %202 = arith.mulf %197, %201 : vector<8x32xf32>
    %c24_60 = arith.constant 24 : index
    %c0_61 = arith.constant 0 : index
    %203 = vector.load %arg13[%c24_60, %c0_61] : memref<64x32xf32, #tpu.memory_space<vmem>>, vector<8x32xf32>
    tpu.vector_store %arg13[%c24_60, %c0_61], %202 {strides = array<i32>} : memref<64x32xf32, #tpu.memory_space<vmem>>, vector<8x32xf32>,
    %c40 = arith.constant 40 : index
    %c0_62 = arith.constant 0 : index
    %204 = vector.load %arg14[%c40, %c0_62] : memref<64x128xf32, #tpu.memory_space<vmem>>, vector<8x128xf32>
    %205 = arith.truncf %182 : vector<8x32xf32> to vector<8x32xbf16>
    %cst_63 = arith.constant dense<0.000000e+00> : vector<8x128xf32>
    %206 = tpu.matmul %205, %18, %cst_63 {dimension_numbers = #tpu.dot_dimension_numbers<[1], [0], [0], [1], [0, 0, 1, 1], [], []>} : vector<8x32xbf16>, vector<32x128xbf16>, vector<8x128xf32> -> vector<8x128xf32>
    %207 = arith.addf %204, %206 : vector<8x128xf32>
    %208 = arith.negf %207 : vector<8x128xf32>
    %209 = math.exp %208 : vector<8x128xf32>
    %cst_64 = arith.constant 1.000000e+00 : f32
    %210 = vector.broadcast %cst_64 : f32 to vector<8x128xf32>
    %211 = arith.addf %210, %209 : vector<8x128xf32>
    %212 = arith.divf %210, %211 : vector<8x128xf32>
    %213 = math.tanh %207 : vector<8x128xf32>
    %214 = vector.extract_strided_slice %212 {offsets = [0, 0], sizes = [8, 32], strides = [1, 1]} : vector<8x128xf32> to vector<8x32xf32>
    %215 = vector.extract_strided_slice %212 {offsets = [0, 32], sizes = [8, 32], strides = [1, 1]} : vector<8x128xf32> to vector<8x32xf32>
    %216 = vector.extract_strided_slice %213 {offsets = [0, 64], sizes = [8, 32], strides = [1, 1]} : vector<8x128xf32> to vector<8x32xf32>
    %217 = vector.extract_strided_slice %212 {offsets = [0, 96], sizes = [8, 32], strides = [1, 1]} : vector<8x128xf32> to vector<8x32xf32>
    %218 = arith.mulf %215, %180 : vector<8x32xf32>
    %219 = arith.mulf %214, %216 : vector<8x32xf32>
    %220 = arith.addf %218, %219 : vector<8x32xf32>
    %221 = math.tanh %220 : vector<8x32xf32>
    %222 = arith.mulf %217, %221 : vector<8x32xf32>
    %223 = tpu.concatenate %182, %202 in 1 : vector<8x32xf32>, vector<8x32xf32> -> vector<8x64xf32>
    %224 = arith.truncf %223 : vector<8x64xf32> to vector<8x64xbf16>
    %cst_65 = arith.constant dense<0.000000e+00> : vector<8x128xf32>
    %225 = tpu.matmul %224, %19, %cst_65 {dimension_numbers = #tpu.dot_dimension_numbers<[1], [0], [0], [1], [0, 0, 1, 1], [], []>} : vector<8x64xbf16>, vector<64x128xbf16>, vector<8x128xf32> -> vector<8x128xf32>
    %226 = vector.broadcast %20 : vector<1x128xf32> to vector<8x128xf32>
    %227 = arith.addf %225, %226 : vector<8x128xf32>
    %228 = arith.negf %227 : vector<8x128xf32>
    %229 = math.exp %228 : vector<8x128xf32>
    %cst_66 = arith.constant 1.000000e+00 : f32
    %230 = vector.broadcast %cst_66 : f32 to vector<8x128xf32>
    %231 = arith.addf %230, %229 : vector<8x128xf32>
    %232 = arith.divf %230, %231 : vector<8x128xf32>
    %233 = math.tanh %227 : vector<8x128xf32>
    %234 = vector.extract_strided_slice %232 {offsets = [0, 0], sizes = [8, 32], strides = [1, 1]} : vector<8x128xf32> to vector<8x32xf32>
    %235 = vector.extract_strided_slice %232 {offsets = [0, 32], sizes = [8, 32], strides = [1, 1]} : vector<8x128xf32> to vector<8x32xf32>
    %236 = vector.extract_strided_slice %233 {offsets = [0, 64], sizes = [8, 32], strides = [1, 1]} : vector<8x128xf32> to vector<8x32xf32>
    %237 = vector.extract_strided_slice %232 {offsets = [0, 96], sizes = [8, 32], strides = [1, 1]} : vector<8x128xf32> to vector<8x32xf32>
    %238 = arith.mulf %235, %200 : vector<8x32xf32>
    %239 = arith.mulf %234, %236 : vector<8x32xf32>
    %240 = arith.addf %238, %239 : vector<8x32xf32>
    %241 = math.tanh %240 : vector<8x32xf32>
    %242 = arith.mulf %237, %241 : vector<8x32xf32>
    %c32_67 = arith.constant 32 : index
    %c0_68 = arith.constant 0 : index
    %243 = vector.load %arg13[%c32_67, %c0_68] : memref<64x32xf32, #tpu.memory_space<vmem>>, vector<8x32xf32>
    tpu.vector_store %arg13[%c32_67, %c0_68], %242 {strides = array<i32>} : memref<64x32xf32, #tpu.memory_space<vmem>>, vector<8x32xf32>,
    %c48 = arith.constant 48 : index
    %c0_69 = arith.constant 0 : index
    %244 = vector.load %arg14[%c48, %c0_69] : memref<64x128xf32, #tpu.memory_space<vmem>>, vector<8x128xf32>
    %245 = arith.truncf %222 : vector<8x32xf32> to vector<8x32xbf16>
    %cst_70 = arith.constant dense<0.000000e+00> : vector<8x128xf32>
    %246 = tpu.matmul %245, %18, %cst_70 {dimension_numbers = #tpu.dot_dimension_numbers<[1], [0], [0], [1], [0, 0, 1, 1], [], []>} : vector<8x32xbf16>, vector<32x128xbf16>, vector<8x128xf32> -> vector<8x128xf32>
    %247 = arith.addf %244, %246 : vector<8x128xf32>
    %248 = arith.negf %247 : vector<8x128xf32>
    %249 = math.exp %248 : vector<8x128xf32>
    %cst_71 = arith.constant 1.000000e+00 : f32
    %250 = vector.broadcast %cst_71 : f32 to vector<8x128xf32>
    %251 = arith.addf %250, %249 : vector<8x128xf32>
    %252 = arith.divf %250, %251 : vector<8x128xf32>
    %253 = math.tanh %247 : vector<8x128xf32>
    %254 = vector.extract_strided_slice %252 {offsets = [0, 0], sizes = [8, 32], strides = [1, 1]} : vector<8x128xf32> to vector<8x32xf32>
    %255 = vector.extract_strided_slice %252 {offsets = [0, 32], sizes = [8, 32], strides = [1, 1]} : vector<8x128xf32> to vector<8x32xf32>
    %256 = vector.extract_strided_slice %253 {offsets = [0, 64], sizes = [8, 32], strides = [1, 1]} : vector<8x128xf32> to vector<8x32xf32>
    %257 = vector.extract_strided_slice %252 {offsets = [0, 96], sizes = [8, 32], strides = [1, 1]} : vector<8x128xf32> to vector<8x32xf32>
    %258 = arith.mulf %255, %220 : vector<8x32xf32>
    %259 = arith.mulf %254, %256 : vector<8x32xf32>
    %260 = arith.addf %258, %259 : vector<8x32xf32>
    %261 = math.tanh %260 : vector<8x32xf32>
    %262 = arith.mulf %257, %261 : vector<8x32xf32>
    %263 = tpu.concatenate %222, %242 in 1 : vector<8x32xf32>, vector<8x32xf32> -> vector<8x64xf32>
    %264 = arith.truncf %263 : vector<8x64xf32> to vector<8x64xbf16>
    %cst_72 = arith.constant dense<0.000000e+00> : vector<8x128xf32>
    %265 = tpu.matmul %264, %19, %cst_72 {dimension_numbers = #tpu.dot_dimension_numbers<[1], [0], [0], [1], [0, 0, 1, 1], [], []>} : vector<8x64xbf16>, vector<64x128xbf16>, vector<8x128xf32> -> vector<8x128xf32>
    %266 = vector.broadcast %20 : vector<1x128xf32> to vector<8x128xf32>
    %267 = arith.addf %265, %266 : vector<8x128xf32>
    %268 = arith.negf %267 : vector<8x128xf32>
    %269 = math.exp %268 : vector<8x128xf32>
    %cst_73 = arith.constant 1.000000e+00 : f32
    %270 = vector.broadcast %cst_73 : f32 to vector<8x128xf32>
    %271 = arith.addf %270, %269 : vector<8x128xf32>
    %272 = arith.divf %270, %271 : vector<8x128xf32>
    %273 = math.tanh %267 : vector<8x128xf32>
    %274 = vector.extract_strided_slice %272 {offsets = [0, 0], sizes = [8, 32], strides = [1, 1]} : vector<8x128xf32> to vector<8x32xf32>
    %275 = vector.extract_strided_slice %272 {offsets = [0, 32], sizes = [8, 32], strides = [1, 1]} : vector<8x128xf32> to vector<8x32xf32>
    %276 = vector.extract_strided_slice %273 {offsets = [0, 64], sizes = [8, 32], strides = [1, 1]} : vector<8x128xf32> to vector<8x32xf32>
    %277 = vector.extract_strided_slice %272 {offsets = [0, 96], sizes = [8, 32], strides = [1, 1]} : vector<8x128xf32> to vector<8x32xf32>
    %278 = arith.mulf %275, %240 : vector<8x32xf32>
    %279 = arith.mulf %274, %276 : vector<8x32xf32>
    %280 = arith.addf %278, %279 : vector<8x32xf32>
    %281 = math.tanh %280 : vector<8x32xf32>
    %282 = arith.mulf %277, %281 : vector<8x32xf32>
    %c40_74 = arith.constant 40 : index
    %c0_75 = arith.constant 0 : index
    %283 = vector.load %arg13[%c40_74, %c0_75] : memref<64x32xf32, #tpu.memory_space<vmem>>, vector<8x32xf32>
    tpu.vector_store %arg13[%c40_74, %c0_75], %282 {strides = array<i32>} : memref<64x32xf32, #tpu.memory_space<vmem>>, vector<8x32xf32>,
    %c56 = arith.constant 56 : index
    %c0_76 = arith.constant 0 : index
    %284 = vector.load %arg14[%c56, %c0_76] : memref<64x128xf32, #tpu.memory_space<vmem>>, vector<8x128xf32>
    %285 = arith.truncf %262 : vector<8x32xf32> to vector<8x32xbf16>
    %cst_77 = arith.constant dense<0.000000e+00> : vector<8x128xf32>
    %286 = tpu.matmul %285, %18, %cst_77 {dimension_numbers = #tpu.dot_dimension_numbers<[1], [0], [0], [1], [0, 0, 1, 1], [], []>} : vector<8x32xbf16>, vector<32x128xbf16>, vector<8x128xf32> -> vector<8x128xf32>
    %287 = arith.addf %284, %286 : vector<8x128xf32>
    %288 = arith.negf %287 : vector<8x128xf32>
    %289 = math.exp %288 : vector<8x128xf32>
    %cst_78 = arith.constant 1.000000e+00 : f32
    %290 = vector.broadcast %cst_78 : f32 to vector<8x128xf32>
    %291 = arith.addf %290, %289 : vector<8x128xf32>
    %292 = arith.divf %290, %291 : vector<8x128xf32>
    %293 = math.tanh %287 : vector<8x128xf32>
    %294 = vector.extract_strided_slice %292 {offsets = [0, 0], sizes = [8, 32], strides = [1, 1]} : vector<8x128xf32> to vector<8x32xf32>
    %295 = vector.extract_strided_slice %292 {offsets = [0, 32], sizes = [8, 32], strides = [1, 1]} : vector<8x128xf32> to vector<8x32xf32>
    %296 = vector.extract_strided_slice %293 {offsets = [0, 64], sizes = [8, 32], strides = [1, 1]} : vector<8x128xf32> to vector<8x32xf32>
    %297 = vector.extract_strided_slice %292 {offsets = [0, 96], sizes = [8, 32], strides = [1, 1]} : vector<8x128xf32> to vector<8x32xf32>
    %298 = arith.mulf %295, %260 : vector<8x32xf32>
    %299 = arith.mulf %294, %296 : vector<8x32xf32>
    %300 = arith.addf %298, %299 : vector<8x32xf32>
    %301 = math.tanh %300 : vector<8x32xf32>
    %302 = arith.mulf %297, %301 : vector<8x32xf32>
    %303 = tpu.concatenate %262, %282 in 1 : vector<8x32xf32>, vector<8x32xf32> -> vector<8x64xf32>
    %304 = arith.truncf %303 : vector<8x64xf32> to vector<8x64xbf16>
    %cst_79 = arith.constant dense<0.000000e+00> : vector<8x128xf32>
    %305 = tpu.matmul %304, %19, %cst_79 {dimension_numbers = #tpu.dot_dimension_numbers<[1], [0], [0], [1], [0, 0, 1, 1], [], []>} : vector<8x64xbf16>, vector<64x128xbf16>, vector<8x128xf32> -> vector<8x128xf32>
    %306 = vector.broadcast %20 : vector<1x128xf32> to vector<8x128xf32>
    %307 = arith.addf %305, %306 : vector<8x128xf32>
    %308 = arith.negf %307 : vector<8x128xf32>
    %309 = math.exp %308 : vector<8x128xf32>
    %cst_80 = arith.constant 1.000000e+00 : f32
    %310 = vector.broadcast %cst_80 : f32 to vector<8x128xf32>
    %311 = arith.addf %310, %309 : vector<8x128xf32>
    %312 = arith.divf %310, %311 : vector<8x128xf32>
    %313 = math.tanh %307 : vector<8x128xf32>
    %314 = vector.extract_strided_slice %312 {offsets = [0, 0], sizes = [8, 32], strides = [1, 1]} : vector<8x128xf32> to vector<8x32xf32>
    %315 = vector.extract_strided_slice %312 {offsets = [0, 32], sizes = [8, 32], strides = [1, 1]} : vector<8x128xf32> to vector<8x32xf32>
    %316 = vector.extract_strided_slice %313 {offsets = [0, 64], sizes = [8, 32], strides = [1, 1]} : vector<8x128xf32> to vector<8x32xf32>
    %317 = vector.extract_strided_slice %312 {offsets = [0, 96], sizes = [8, 32], strides = [1, 1]} : vector<8x128xf32> to vector<8x32xf32>
    %318 = arith.mulf %315, %280 : vector<8x32xf32>
    %319 = arith.mulf %314, %316 : vector<8x32xf32>
    %320 = arith.addf %318, %319 : vector<8x32xf32>
    %321 = math.tanh %320 : vector<8x32xf32>
    %322 = arith.mulf %317, %321 : vector<8x32xf32>
    %c48_81 = arith.constant 48 : index
    %c0_82 = arith.constant 0 : index
    %323 = vector.load %arg13[%c48_81, %c0_82] : memref<64x32xf32, #tpu.memory_space<vmem>>, vector<8x32xf32>
    tpu.vector_store %arg13[%c48_81, %c0_82], %322 {strides = array<i32>} : memref<64x32xf32, #tpu.memory_space<vmem>>, vector<8x32xf32>,
    %324 = tpu.concatenate %302, %322 in 1 : vector<8x32xf32>, vector<8x32xf32> -> vector<8x64xf32>
    %325 = arith.truncf %324 : vector<8x64xf32> to vector<8x64xbf16>
    %cst_83 = arith.constant dense<0.000000e+00> : vector<8x128xf32>
    %326 = tpu.matmul %325, %19, %cst_83 {dimension_numbers = #tpu.dot_dimension_numbers<[1], [0], [0], [1], [0, 0, 1, 1], [], []>} : vector<8x64xbf16>, vector<64x128xbf16>, vector<8x128xf32> -> vector<8x128xf32>
    %327 = vector.broadcast %20 : vector<1x128xf32> to vector<8x128xf32>
    %328 = arith.addf %326, %327 : vector<8x128xf32>
    %329 = arith.negf %328 : vector<8x128xf32>
    %330 = math.exp %329 : vector<8x128xf32>
    %cst_84 = arith.constant 1.000000e+00 : f32
    %331 = vector.broadcast %cst_84 : f32 to vector<8x128xf32>
    %332 = arith.addf %331, %330 : vector<8x128xf32>
    %333 = arith.divf %331, %332 : vector<8x128xf32>
    %334 = math.tanh %328 : vector<8x128xf32>
    %335 = vector.extract_strided_slice %333 {offsets = [0, 0], sizes = [8, 32], strides = [1, 1]} : vector<8x128xf32> to vector<8x32xf32>
    %336 = vector.extract_strided_slice %333 {offsets = [0, 32], sizes = [8, 32], strides = [1, 1]} : vector<8x128xf32> to vector<8x32xf32>
    %337 = vector.extract_strided_slice %334 {offsets = [0, 64], sizes = [8, 32], strides = [1, 1]} : vector<8x128xf32> to vector<8x32xf32>
    %338 = vector.extract_strided_slice %333 {offsets = [0, 96], sizes = [8, 32], strides = [1, 1]} : vector<8x128xf32> to vector<8x32xf32>
    %339 = arith.mulf %336, %320 : vector<8x32xf32>
    %340 = arith.mulf %335, %337 : vector<8x32xf32>
    %341 = arith.addf %339, %340 : vector<8x32xf32>
    %342 = math.tanh %341 : vector<8x32xf32>
    %343 = arith.mulf %338, %342 : vector<8x32xf32>
    %c56_85 = arith.constant 56 : index
    %c0_86 = arith.constant 0 : index
    %344 = vector.load %arg13[%c56_85, %c0_86] : memref<64x32xf32, #tpu.memory_space<vmem>>, vector<8x32xf32>
    tpu.vector_store %arg13[%c56_85, %c0_86], %343 {strides = array<i32>} : memref<64x32xf32, #tpu.memory_space<vmem>>, vector<8x32xf32>,
    return
  }
}

</mosaic_0001>

<bundles_post_ra>
// kernel: tpu_custom_call.1
= control target key start
LH: loop header
LB: loop body
LE: loop exit
PB: predicated region body
PF: predicated region fallthrough
CT: control target
= control target key end

     0   :  { %18 = vsyncpa [#allocation4], 0  ;;  %s3056_s0 = inlined_call_operand.vmem [shape: bf16[64,64], index: 0, kind: input, shape index: {}]   ;;  %s3057_s1 = inlined_call_operand.vmem [shape: bf16[64,32], index: 1, kind: input, shape index: {}]   ;;  %s3058_s2 = inlined_call_operand.hbm [shape: bf16[32,32], index: 2, kind: input, shape index: {}]   ;;  %s3059_s3 = inlined_call_operand.vmem [shape: f32[1,32], index: 3, kind: input, shape index: {}]   ;;  %s3060_s4 = inlined_call_operand.hbm [shape: bf16[32,128], index: 4, kind: input, shape index: {}]   ;;  %s3061_s5 = inlined_call_operand.hbm [shape: bf16[32,128], index: 5, kind: input, shape index: {}]   ;;  %s3062_s6 = inlined_call_operand.hbm [shape: f32[1,128], index: 6, kind: input, shape index: {}]   ;;  %s3063_s7 = inlined_call_operand.vmem [shape: f32[8,32], index: 7, kind: input, shape index: {}]   ;;  %s3064_s8 = inlined_call_operand.hbm [shape: f32[8,32], index: 8, kind: input, shape index: {}]   ;;  %s3065_s9 = inlined_call_operand.vmem [shape: bf16[64,128], index: 9, kind: input, shape index: {}]   ;;  %s3066_s10 = inlined_call_operand.hbm [shape: f32[1,128], index: 10, kind: input, shape index: {}]   ;;  %s3067_s11 = inlined_call_operand.vmem [shape: f32[8,32], index: 11, kind: input, shape index: {}]   ;;  %s3068_s12 = inlined_call_operand.vmem [shape: f32[8,32], index: 12, kind: input, shape index: {}]   ;;  %s3069_s13 = inlined_call_operand.vmem [shape: f32[64,32], index: 13, kind: output, shape index: {}]  }
   0x1   :  { %19 = vsyncpa [#allocation6], 0 }
   0x2   :  { %20 = vsyncpa [#allocation9], 0 }
   0x3   :  { %21 = vsyncpa [#allocation12], 0  ;;  %s2436_s25 = smov [#allocation5]   ;;  %s2437_s27 = smov [#allocation8]  }
   0x4   :  { %s45_s26 = sshll.u32 %s2436_s25, 4  ;;  %s70_s28 = sshll.u32 %s2437_s27, 4  ;;  %s46_s26 = int_to_ptr.vmem [resolvable:$true] %s45_s26  ;;  %s2517_s28 = int_to_ptr.vmem [resolvable:$true] %s70_s28 }
   0x5   :  { %s2296_s14 = scalar_lea.hbm %s3060_s4, 256 }
   0x6   :  { %p2297_p0 = scmp.ne.s32.totalorder %s3060_s4, %s2296_s14  ;;  %p2300_p1 = scmp.lt.u32.totalorder %s2296_s14, %s3060_s4 }
   0x8   :  { %p2302_p2 = pnand %p2300_p1, %p2297_p0 }
   0xa   :  { %2305 = shalt.err (!%p2302_p2)
}
   0xb   :  { %s2306_s19 = scalar_lea.vmem %s46_s26, 256  ;;  %p2311_p4 = scmp.lt.s32.totalorder %s46_s26, %s46_s26 }
   0xc   :  { %p2307_p3 = scmp.ne.s32.totalorder %s46_s26, %s2306_s19  ;;  %p2312_p5 = scmp.lt.s32.totalorder %s2306_s19, %s2306_s19 }
   0xe   :  { %p2313_p6 = por %p2312_p5, %p2311_p4 }
  0x10   :  { %p2314_p7 = pnand %p2313_p6, %p2307_p3 }
  0x12   :  { %2317 = shalt.err (!%p2314_p7)
}
  0x13   :  { %s2438_s20 = smov 64   ;;  %s2439_s21 = smov 4  }
  0x14   :  { %51 = dma.hbm_to_vmem [thread:$0]  %s3060_s4, 256, %s46_s26, [#allocation6], %s2438_s20, %s2438_s20, %s2439_s21  }
  0x15   :  { %s2318_s27 = scalar_lea.hbm %s3062_s6, 16 }
  0x16   :  { %p2319_p8 = scmp.ne.s32.totalorder %s3062_s6, %s2318_s27  ;;  %p2322_p9 = scmp.lt.u32.totalorder %s2318_s27, %s3062_s6 }
  0x18   :  { %p2324_p10 = pnand %p2322_p9, %p2319_p8 }
  0x1a   :  { %2327 = shalt.err (!%p2324_p10)
}
  0x1b   :  { %s2328_s16 = scalar_lea.vmem %s2517_s28, 16  ;;  %s2332_s4 = scalar_lea.vmem %s2517_s28, 32 }
  0x1c   :  { %p2329_p11 = scmp.ne.s32.totalorder %s2517_s28, %s2328_s16  ;;  %p2333_p12 = scmp.lt.s32.totalorder %s2517_s28, %s2517_s28 }
  0x1d   :  { %p2334_p13 = scmp.lt.s32.totalorder %s2332_s4, %s2328_s16 }
  0x1f   :  { %p2335_p0 = por %p2334_p13, %p2333_p12 }
  0x21   :  { %p2336_p1 = pnand %p2335_p0, %p2329_p11 }
  0x23   :  { %2339 = shalt.err (!%p2336_p1)
}
  0x24   :  { %73 = dma.hbm_to_vmem [thread:$0]  %s3062_s6, 16, %s2517_s28, [#allocation9]  }
  0x25   :  { %s2440_s18 = smov [#allocation3]   ;;  %s2441_s22 = smov [#allocation7]  }
  0x26   :  { %s31_s19 = sshll.u32 %s2440_s18, 4  ;;  %s57_s23 = sshll.u32 %s2441_s22, 4  ;;  %s32_s19 = int_to_ptr.vmem [resolvable:$true] %s31_s19  ;;  %s2552_s23 = int_to_ptr.vmem [resolvable:$true] %s57_s23 }
  0x27   :  { %s2340_s27 = scalar_lea.hbm %s3058_s2, 256 }
  0x28   :  { %p2341_p2 = scmp.ne.s32.totalorder %s3058_s2, %s2340_s27  ;;  %p2344_p3 = scmp.lt.u32.totalorder %s2340_s27, %s3058_s2 }
  0x2a   :  { %p2346_p4 = pnand %p2344_p3, %p2341_p2 }
  0x2c   :  { %2349 = shalt.err (!%p2346_p4)
}
  0x2d   :  { %s2350_s6 = scalar_lea.vmem %s32_s19, 256  ;;  %p2355_p6 = scmp.lt.s32.totalorder %s32_s19, %s32_s19 }
  0x2e   :  { %p2351_p5 = scmp.ne.s32.totalorder %s32_s19, %s2350_s6  ;;  %p2356_p7 = scmp.lt.s32.totalorder %s2350_s6, %s2350_s6 }
  0x30   :  { %p2357_p8 = por %p2356_p7, %p2355_p6 }
  0x32   :  { %p2358_p9 = pnand %p2357_p8, %p2351_p5 }
  0x34   :  { %2361 = shalt.err (!%p2358_p9)
}
  0x35   :  { %37 = dma.hbm_to_vmem [thread:$0]  %s3058_s2, 256, %s32_s19, [#allocation4], %s2438_s20, %s2438_s20, %s2439_s21  }
  0x36   :  { %s2362_s17 = scalar_lea.hbm %s3061_s5, 256 }
  0x37   :  { %p2363_p10 = scmp.ne.s32.totalorder %s3061_s5, %s2362_s17  ;;  %p2366_p11 = scmp.lt.u32.totalorder %s2362_s17, %s3061_s5 }
  0x39   :  { %p2368_p12 = pnand %p2366_p11, %p2363_p10 }
  0x3b   :  { %2371 = shalt.err (!%p2368_p12)
}
  0x3c   :  { %s2372_s27 = scalar_lea.vmem %s2552_s23, 256  ;;  %p2377_p0 = scmp.lt.s32.totalorder %s2552_s23, %s2552_s23 }
  0x3d   :  { %p2373_p13 = scmp.ne.s32.totalorder %s2552_s23, %s2372_s27  ;;  %p2378_p1 = scmp.lt.s32.totalorder %s2372_s27, %s2372_s27 }
  0x3f   :  { %p2379_p2 = por %p2378_p1, %p2377_p0 }
  0x41   :  { %p2380_p3 = pnand %p2379_p2, %p2373_p13 }
  0x43   :  { %2383 = shalt.err (!%p2380_p3)
}
  0x44   :  { %63 = dma.hbm_to_vmem [thread:$0]  %s3061_s5, 256, %s2552_s23, [#allocation6], %s2438_s20, %s2438_s20, %s2439_s21  }
  0x45   :  { %s2442_s29 = smov [#allocation10]   ;;  %s2443_s14 = smov [#allocation11]  }
  0x46   :  { %s82_s30 = sshll.u32 %s2442_s29, 4  ;;  %s94_s15 = sshll.u32 %s2443_s14, 4  ;;  %s83_s30 = int_to_ptr.vmem [resolvable:$true] %s82_s30  ;;  %s95_s15 = int_to_ptr.vmem [resolvable:$true] %s94_s15 }
  0x47   :  { %s2384_s16 = scalar_lea.hbm %s3064_s8, 128 }
  0x48   :  { %p2385_p4 = scmp.ne.s32.totalorder %s3064_s8, %s2384_s16  ;;  %p2388_p5 = scmp.lt.u32.totalorder %s2384_s16, %s3064_s8 }
  0x4a   :  { %p2390_p6 = pnand %p2388_p5, %p2385_p4 }
  0x4c   :  { %2393 = shalt.err (!%p2390_p6)
}
  0x4d   :  { %s2394_s5 = scalar_lea.vmem %s83_s30, 128  ;;  %p2399_p8 = scmp.lt.s32.totalorder %s83_s30, %s83_s30 }
  0x4e   :  { %p2395_p7 = scmp.ne.s32.totalorder %s83_s30, %s2394_s5  ;;  %p2400_p9 = scmp.lt.s32.totalorder %s2394_s5, %s2394_s5 }
  0x50   :  { %p2401_p10 = por %p2400_p9, %p2399_p8 }
  0x52   :  { %p2402_p11 = pnand %p2401_p10, %p2395_p7 }
  0x54   :  { %2405 = shalt.err (!%p2402_p11)
}
  0x55   :  { %85 = dma.hbm_to_vmem [thread:$0]  %s3064_s8, 128, %s83_s30, [#allocation9]  }
  0x56   :  { %s2406_s25 = scalar_lea.hbm %s3066_s10, 16 }
  0x57   :  { %p2407_p12 = scmp.ne.s32.totalorder %s3066_s10, %s2406_s25  ;;  %p2410_p13 = scmp.lt.u32.totalorder %s2406_s25, %s3066_s10 }
  0x59   :  { %p2412_p0 = pnand %p2410_p13, %p2407_p12 }
  0x5b   :  { %2415 = shalt.err (!%p2412_p0)
}
  0x5c   :  { %s2416_s14 = scalar_lea.vmem %s95_s15, 16  ;;  %s2420_s6 = scalar_lea.vmem %s95_s15, 32 }
  0x5d   :  { %p2417_p1 = scmp.ne.s32.totalorder %s95_s15, %s2416_s14  ;;  %p2421_p2 = scmp.lt.s32.totalorder %s95_s15, %s95_s15 }
  0x5e   :  { %p2422_p3 = scmp.lt.s32.totalorder %s2420_s6, %s2416_s14 }
  0x60   :  { %p2423_p4 = por %p2422_p3, %p2421_p2 }
  0x62   :  { %p2424_p5 = pnand %p2423_p4, %p2417_p1 }
  0x64   :  { %2427 = shalt.err (!%p2424_p5)
}
  0x65   :  { %97 = dma.hbm_to_vmem [thread:$0]  %s3066_s10, 16, %s95_s15, [#allocation12]  }
  0x66   :  { %2428 = dma.done.wait [#allocation4], 256  }
  0x67   :  { %2429 = vsyncadd [#allocation4], 4294967040 }
  0x68   :  { %2430 = dma.done.wait [#allocation6], 512  }
  0x69   :  { %2431 = vsyncadd [#allocation6], 4294966784 }
  0x6a   :  { %2432 = dma.done.wait [#allocation9], 144  }
  0x6b   :  { %2433 = vsyncadd [#allocation9], 4294967152 }
  0x6c   :  { %2434 = dma.done.wait [#allocation12], 16  }
  0x6d   :  { %2435 = vsyncadd [#allocation12], 4294967280  ;;  %v2150_v0 = vld [vmem:[#allocation3] sm:$0xff]   ;;  %v2151_v1 = vld [vmem:[#allocation3 + $0x8] sm:$0xff]   ;;  %vm165_vm0 = vcmask 261120   ;;  %vm282_vm1 = vcmask 523264  }
  0x6e   :  { %1934 = vmatprep.subr.bf16.mxu0 %v2150_v0  ;;  %v2152_v2 = vld [vmem:[%s3057_s1] sm:$0xff]   ;;  %v2153_v3 = vld [vmem:[%s3057_s1 + $0x8] sm:$0xff]   ;;  %v2154_v4 = vld [vmem:[%s3057_s1 + $0x10] sm:$0xff]   ;;  %v2444_v23 = vmov 0.0   ;;  %vm2445_vm2 = vmmov 0  }
  0x6f   :  { %1935 = vmatpush3.bf16.msra.mxu0 %v2150_v0  ;;  %1938 = vmatprep.mubr.msk.bf16.mxu0 %vm165_vm0, %v2152_v2  ;;  %v2155_v5 = vld [vmem:[%s3057_s1 + $0x18] sm:$0xff]   ;;  %v2156_v6 = vld [vmem:[%s3056_s0] sm:$0xff]   ;;  %v2158_v7 = vld [vmem:[#allocation5] sm:$0xff]  }
  0x70   :  { %1936 = vmatprep.subr.bf16.mxu0 %v2151_v1  ;;  %1954 = vmatprep.mubr.msk.bf16.mxu1 %vm282_vm1, %v2156_v6  ;;  %v2157_v20 = vld [vmem:[%s3056_s0 + $0x8] sm:$0xff]   ;;  %v2159_v21 = vld [vmem:[%s3056_s0 + $0x10] sm:$0xff]   ;;  %v2639_v22 = vld [vmem:[#allocation7] sm:$0xff]  }
  0x71   :  { %v2161_v24 = vld [vmem:[%s3056_s0 + $0x18] sm:$0xff]   ;;  %v2650_v26 = vld [vmem:[#allocation7 + $0x8] sm:$0xff]   ;;  %v493_v27 = vld [vmem:[%s3063_s7] sm:$0xff] }
  0x72   :  { %v2162_v25 = vld [vmem:[#allocation5 + $0x8] sm:$0xff]   ;;  %v498_v28 = vpack.c.bf16 %v493_v27, %v493_v27  ;;  %v1795_v29 = vld [vmem:[%s3059_s3] ss:$0 sm:$0xff]  ;;  %v1804_v62 = vld [vmem:[#allocation8] ss:$0 sm:$0xff]  ;;  %s2446_s3 = smov 32  }
  0x73   :  { %1937 = vmatpush3.bf16.msra.mxu0 %v2151_v1 }
  0x74   :  { %1962 = vmatprep.subr.bf16.mxu0 %v2158_v7 }
  0x76   :  { %1939 = vmatmul.mubr.msk.bf16.vlgmr.msra.gmra.mrb[0].mxu0 %vm165_vm0, %v2153_v3 }
  0x77   :  { %1942 = vmatprep.mubr.msk.bf16.mxu0 %vm165_vm0, %v2154_v4  ;;  %1963 = vmatpush3.bf16.msra.mxu0 %v2158_v7 }
  0x78   :  { %1964 = vmatprep.subr.bf16.mxu0 %v2162_v25 }
  0x7b   :  { %1965 = vmatpush3.bf16.msra.mxu0 %v2162_v25 }
  0x7c   :  { %1982 = vmatprep.subr.bf16.mxu0 %v2444_v23 }
  0x7e   :  { %1943 = vmatmul.mubr.msk.bf16.gmra.mrb[4].mxu0 %vm165_vm0, %v2155_v5 }
 0x149   :  { %v1940_v8 = vpop.f32.mrb[0].mxu0 }
 0x14a   :  { %v212_v9 = vpop.f32.mrb[1].mxu0 }
 0x14b   :  { %v1941_v10 = vpop.f32.mrb[2].mxu0 }
 0x14c   :  { %v252_v11 = vpack.c.bf16 %v1941_v10, %v1940_v8  ;;  %v215_v12 = vpop.f32.mrb[3].mxu0 }
 0x14d   :  { %v251_v13 = vpack.c.bf16 %v215_v12, %v212_v9 }
 0x14f   :  { %1946 = vmatprep.subr.bf16.mxu1 %v251_v13 }
 0x150   :  { %1947 = vmatpush3.bf16.msra.mxu1 %v251_v13 }
 0x151   :  { %v1944_v14 = vpop.f32.mrb[4].mxu0  ;;  %1948 = vmatprep.subr.bf16.mxu1 %v252_v11 }
 0x152   :  { %v228_v15 = vpop.f32.mrb[5].mxu0 }
 0x153   :  { %v1945_v16 = vpop.f32.mrb[6].mxu0 }
 0x154   :  { %v254_v17 = vpack.c.bf16 %v1945_v16, %v1944_v14  ;;  %v231_v18 = vpop.f32.mrb[7].mxu0  ;;  %1949 = vmatpush3.bf16.msra.mxu1 %v252_v11 }
 0x155   :  { %v253_v19 = vpack.c.bf16 %v231_v18, %v228_v15 }
 0x157   :  { %1950 = vmatprep.subr.bf16.mxu1 %v253_v19 }
 0x158   :  { %1951 = vmatpush3.bf16.msra.mxu1 %v253_v19 }
 0x159   :  { %1952 = vmatprep.subr.bf16.mxu1 %v254_v17 }
 0x15c   :  { %1953 = vmatpush3.bf16.msra.mxu1 %v254_v17  ;;  %v495_v17 = vld [vmem:[#allocation10] sm:$0xff] }
 0x15d   :  { %1974 = vmatprep.subr.bf16.mxu1 %v2444_v23 }
 0x15f   :  { %1955 = vmatmul.mubr.msk.bf16.vlgmr.msra.gmra.mrb[0].mxu1 %vm282_vm1, %v2157_v20 }
 0x160   :  { %1958 = vmatprep.mubr.msk.bf16.mxu1 %vm282_vm1, %v2159_v21  ;;  %1975 = vmatpush3.bf16.msra.mxu1 %v2639_v22 }
 0x161   :  { %1976 = vmatprep.subr.bf16.mxu1 %v2444_v23 }
 0x164   :  { %1977 = vmatpush3.bf16.msra.mxu1 %v2650_v26 }
 0x165   :  { %1990 = vmatprep.subr.bf16.mxu1 %v2444_v23 }
 0x167   :  { %1959 = vmatmul.mubr.msk.bf16.gmra.mrb[4].mxu1 %vm282_vm1, %v2161_v24 }
 0x168   :  { %1978 = vmatprep.mubr.msk.bf16.mxu1 %vm2445_vm2, %v2444_v23 }
 0x16f   :  { %1979 = vmatmul.mubr.msk.bf16.vlgmr.msra.gmra.mrb[8].mxu1 %vm165_vm0, %v498_v28 }
 0x170   :  { %1998 = vmatprep.mubr.msk.bf16.mxu1 %vm2445_vm2, %v2444_v23 }
 0x232   :  { %v1956_v30 = vpop.f32.mrb[0].mxu1 }
 0x233   :  { %v338_v31 = vadd.f32 %v1956_v30, %v1795_v29  ;;  %v329_v32 = vpop.f32.mrb[1].mxu1 }
 0x234   :  { %v330_v33 = vadd.f32 %v1795_v29, %v329_v32  ;;  %v1957_v34 = vpop.f32.mrb[2].mxu1  ;;  %v2705_v32 = vld [vmem:[%s3065_s9 + $0x8] sm:$0xff]  }
 0x235   :  { %v341_v35 = vadd.f32 %v1957_v34, %v1795_v29  ;;  %v332_v36 = vpop.f32.mrb[3].mxu1  ;;  %v362_v38 = vmax.f32 %v338_v31, 0.0  ;;  %v2699_v31 = vld [vmem:[%s3065_s9] sm:$0xff]  }
 0x236   :  { %v333_v37 = vadd.f32 %v1795_v29, %v332_v36  ;;  %v360_v40 = vmax.f32 %v330_v33, 0.0  ;;  %1991 = vmatpush3.bf16.msra.mxu1 %v2699_v31  ;;  %v2712_v33 = vld [vmem:[%s3065_s9 + $0x10] sm:$0xff]   ;;  %v494_v36 = vld [vmem:[%s3067_s11] sm:$0xff] }
 0x237   :  { %v363_v39 = vmax.f32 %v341_v35, 0.0  ;;  %1992 = vmatprep.subr.bf16.mxu1 %v2444_v23  ;;  %v2721_v35 = vld [vmem:[%s3065_s9 + $0x18] sm:$0xff]  }
 0x238   :  { %v361_v41 = vmax.f32 %v333_v37, 0.0 }
 0x239   :  { %v369_v42 = vpack.c.bf16 %v363_v39, %v362_v38 }
 0x23a   :  { %v368_v43 = vpack.c.bf16 %v361_v41, %v360_v40  ;;  %v1960_v44 = vpop.f32.mrb[4].mxu1  ;;  %1993 = vmatpush3.bf16.msra.mxu1 %v2705_v32 }
 0x23b   :  { %v354_v45 = vadd.f32 %v1960_v44, %v1795_v29  ;;  %v345_v46 = vpop.f32.mrb[5].mxu1  ;;  %1994 = vmatprep.subr.bf16.mxu1 %v2444_v23 }
 0x23c   :  { %1966 = vmatprep.mubr.msk.bf16.mxu0 %vm165_vm0, %v368_v43  ;;  %v346_v47 = vadd.f32 %v1795_v29, %v345_v46  ;;  %v1961_v48 = vpop.f32.mrb[6].mxu1 }
 0x23d   :  { %1967 = vmatmul.mubr.msk.bf16.vlgmr.msra.gmra.mrb[8].mxu0 %vm165_vm0, %v369_v42  ;;  %v366_v49 = vmax.f32 %v354_v45, 0.0  ;;  %v357_v50 = vadd.f32 %v1961_v48, %v1795_v29  ;;  %v348_v51 = vpop.f32.mrb[7].mxu1 }
 0x23e   :  { %v364_v52 = vmax.f32 %v346_v47, 0.0  ;;  %v349_v53 = vadd.f32 %v1795_v29, %v348_v51  ;;  %1983 = vmatpush3.bf16.msra.mxu0 %v2639_v22  ;;  %1995 = vmatpush3.bf16.msra.mxu1 %v2712_v33 }
 0x23f   :  { %v367_v54 = vmax.f32 %v357_v50, 0.0  ;;  %1984 = vmatprep.subr.bf16.mxu0 %v2444_v23  ;;  %1996 = vmatprep.subr.bf16.mxu1 %v2444_v23 }
 0x240   :  { %v365_v55 = vmax.f32 %v349_v53, 0.0 }
 0x241   :  { %v371_v56 = vpack.c.bf16 %v367_v54, %v366_v49 }
 0x242   :  { %v370_v57 = vpack.c.bf16 %v365_v55, %v364_v52  ;;  %1985 = vmatpush3.bf16.msra.mxu0 %v2650_v26  ;;  %v548_v58 = vpop.f32.mrb[8].mxu1  ;;  %1997 = vmatpush3.bf16.msra.mxu1 %v2721_v35  ;;  %v2746_v52 = vld [vmem:[#allocation11] ss:$0 sm:$0xff] }
 0x243   :  { %2002 = vmatprep.subr.bf16.mxu0 %v2444_v23  ;;  %v1980_v59 = vpop.f32.mrb[9].mxu1  ;;  %2022 = vmatprep.subr.bf16.mxu1 %v2444_v23 }
 0x244   :  { %1970 = vmatprep.mubr.msk.bf16.mxu0 %vm165_vm0, %v370_v57  ;;  %v551_v60 = vpop.f32.mrb[10].mxu1 }
 0x245   :  { %1971 = vmatmul.mubr.msk.bf16.gmra.mrb[12].mxu0 %vm165_vm0, %v371_v56  ;;  %v1981_v61 = vpop.f32.mrb[11].mxu1  ;;  %v496_v60 = vld [vmem:[%s3068_s12] sm:$0xff] }
 0x246   :  { %1986 = vmatprep.mubr.msk.bf16.mxu0 %vm2445_vm2, %v2444_v23 }
 0x310   :  { %v1968_v63 = vpop.f32.mrb[8].mxu0 }
 0x311   :  { %v2676_v0 = vadd.f32 %v1968_v63, %v1804_v62  ;;  %v441_v1 = vpop.f32.mrb[9].mxu0 }
 0x312   :  { %v442_v2 = vadd.f32 %v1804_v62, %v441_v1  ;;  %v1969_v3 = vpop.f32.mrb[10].mxu0 }
 0x313   :  { %v2678_v4 = vadd.f32 %v1969_v3, %v1804_v62  ;;  %v444_v5 = vpop.f32.mrb[11].mxu0 }
 0x314   :  { %v554_v6 = vadd.f32 %v548_v58, %v442_v2  ;;  %v2680_v7 = vadd.f32 %v1804_v62, %v444_v5 }
 0x316   :  { %2168 = vtanh.f32 %v554_v6  ;;  %v1814_v18 = vmul.f32 -1.442695, %v554_v6 }
 0x318   :  { %v1972_v8 = vpop.f32.mrb[12].mxu0  ;;  %2170 = vpow2.f32 %v1814_v18 }
 0x319   :  { %v2682_v9 = vadd.f32 %v1972_v8, %v1804_v62  ;;  %v457_v10 = vpop.f32.mrb[13].mxu0 }
 0x31a   :  { %v2684_v11 = vadd.f32 %v1804_v62, %v457_v10  ;;  %v1973_v12 = vpop.f32.mrb[14].mxu0 }
 0x31b   :  { %v2686_v13 = vadd.f32 %v1973_v12, %v1804_v62  ;;  %v460_v14 = vpop.f32.mrb[15].mxu0 }
 0x31c   :  { %v2688_v15 = vadd.f32 %v1804_v62, %v460_v14 }
 0x320   :  { %v2169_v16 = vpop.eup %2168 }
 0x321   :  { %568 = vrot.lane.b32.xlu0 %v2169_v16, %s2438_s20 }
 0x322   :  { %v2171_v19 = vpop.eup %2170 }
 0x323   :  { %v558_v20 = vadd.f32 1.0, %v2171_v19 }
 0x325   :  { %563 = vrot.lane.b32.xlu0 %v495_v17, %s2446_s3  ;;  %2172 = vrcp.f32 %v558_v20 }
 0x32f   :  { %v2173_v21 = vpop.eup %2172 }
 0x393   :  { %v569_v24 = vpop.permute.xlu0 %568 }
 0x394   :  { %v571_v25 = vmul.f32 %v2173_v21, %v569_v24 }
 0x396   :  { %573 = vrot.lane.b32.xlu1 %v571_v25, %s2446_s3 }
 0x397   :  { %v564_v27 = vpop.permute.xlu0 %563 }
 0x398   :  { %v566_v28 = vmul.f32 %v2173_v21, %v564_v27 }
 0x408   :  { %v574_v29 = vpop.permute.xlu1 %573 }
 0x409   :  { %v2693_v30 = vadd.f32 %v574_v29, %v566_v28 }
 0x40b   :  { %2174 = vtanh.f32 %v2693_v30 }
 0x415   :  { %v2175_v34 = vpop.eup %2174 }
 0x416   :  { %579 = vrot.lane.b32.xlu1 %v2175_v34, %s2438_s20 }
 0x488   :  { %v580_v37 = vpop.permute.xlu1 %579 }
 0x489   :  { %v582_v38 = vmul.f32 %v2173_v21, %v580_v37 }
 0x48b   :  { %v2145_v39 = vpack.i.bf16 %v494_v36, %v582_v38  ;;  %v584_v40 = vpack.c.bf16 %v582_v38, %v582_v38 }
 0x48d   :  { %2146 = vrot.lane.b32.xlu1 %v2145_v39, %s2446_s3  ;;  %586 = vrot.lane.b32.xlu0 %v584_v40, %s2446_s3 }
 0x4ff   :  { %v2147_v41 = vpop.permute.xlu1 %2146  ;;  %v587_v42 = vpop.permute.xlu0 %586 }
 0x500   :  { %v2149_v43 = vunpack.i.h.bf16 %v2147_v41  ;;  %v2148_v44 = vunpack.i.l.bf16 %v2147_v41  ;;  %1987 = vmatmul.mubr.msk.bf16.vlgmr.msra.gmra.mrb[16].mxu0 %vm165_vm0, %v587_v42 }
 0x501   :  { %2003 = vmatpush3.bf16.msra.mxu0 %v2639_v22  ;;  %2006 = vmatprep.mubr.msk.bf16.mxu0 %vm2445_vm2, %v2444_v23 }
 0x502   :  { %v664_v45 = vsel %vm165_vm0, %v2148_v44, %v2149_v43  ;;  %2004 = vmatprep.subr.bf16.mxu0 %v2444_v23 }
 0x503   :  { %v665_v46 = vpack.c.bf16 %v664_v45, %v664_v45 }
 0x505   :  { %1999 = vmatmul.mubr.msk.bf16.vlgmr.msra.gmra.mrb[12].mxu1 %vm282_vm1, %v665_v46  ;;  %2005 = vmatpush3.bf16.msra.mxu0 %v2650_v26 }
 0x506   :  { %2010 = vmatprep.subr.bf16.mxu0 %v2444_v23  ;;  %2023 = vmatpush3.bf16.msra.mxu1 %v2639_v22 }
 0x507   :  { %2024 = vmatprep.subr.bf16.mxu1 %v2444_v23  ;;  %2026 = vmatprep.mubr.msk.bf16.mxu1 %vm2445_vm2, %v2444_v23 }
 0x50a   :  { %2025 = vmatpush3.bf16.msra.mxu1 %v2650_v26 }
 0x50b   :  { %2030 = vmatprep.subr.bf16.mxu1 %v2444_v23 }
 0x5d3   :  { %v625_v47 = vpop.f32.mrb[16].mxu0 }
 0x5d4   :  { %v631_v48 = vadd.f32 %v625_v47, %v2680_v7  ;;  %v1988_v49 = vpop.f32.mrb[17].mxu0 }
 0x5d5   :  { %v628_v50 = vpop.f32.mrb[18].mxu0 }
 0x5d6   :  { %2176 = vtanh.f32 %v631_v48  ;;  %v1989_v51 = vpop.f32.mrb[19].mxu0  ;;  %v1816_v61 = vmul.f32 -1.442695, %v631_v48 }
 0x5d8   :  { %v733_v53 = vpop.f32.mrb[12].mxu1 }
 0x5d9   :  { %v734_v54 = vadd.f32 %v2746_v52, %v733_v53  ;;  %v2000_v55 = vpop.f32.mrb[13].mxu1 }
 0x5da   :  { %v736_v56 = vpop.f32.mrb[14].mxu1 }
 0x5db   :  { %2178 = vtanh.f32 %v734_v54  ;;  %v2001_v57 = vpop.f32.mrb[15].mxu1  ;;  %v1823_v62 = vmul.f32 -1.442695, %v734_v54 }
 0x5dc   :  { %2180 = vpow2.f32 %v1816_v61 }
 0x5dd   :  { %2182 = vpow2.f32 %v1823_v62 }
 0x5e0   :  { %v2177_v58 = vpop.eup %2176 }
 0x5e1   :  { %641 = vrot.lane.b32.xlu0 %v2177_v58, %s2438_s20 }
 0x5e5   :  { %v2179_v59 = vpop.eup %2178 }
 0x5e6   :  { %752 = vrot.lane.b32.xlu1 %v2179_v59, %s2438_s20  ;;  %v2181_v63 = vpop.eup %2180 }
 0x5e7   :  { %v635_v1 = vadd.f32 1.0, %v2181_v63  ;;  %v2183_v2 = vpop.eup %2182 }
 0x5e8   :  { %v742_v3 = vadd.f32 1.0, %v2183_v2 }
 0x5e9   :  { %2184 = vrcp.f32 %v635_v1 }
 0x5ea   :  { %747 = vrot.lane.b32.xlu1 %v496_v60, %s2446_s3  ;;  %2186 = vrcp.f32 %v742_v3 }
 0x5f3   :  { %v2185_v5 = vpop.eup %2184 }
 0x5f4   :  { %v2187_v8 = vpop.eup %2186  ;;  %v639_v14 = vmul.f32 %v2185_v5, %v2693_v30 }
 0x653   :  { %v642_v6 = vpop.permute.xlu0 %641 }
 0x654   :  { %v644_v7 = vmul.f32 %v2185_v5, %v642_v6 }
 0x656   :  { %646 = vrot.lane.b32.xlu0 %v644_v7, %s2446_s3 }
 0x658   :  { %v753_v10 = vpop.permute.xlu1 %752 }
 0x659   :  { %v755_v12 = vmul.f32 %v2187_v8, %v753_v10 }
 0x65b   :  { %757 = vrot.lane.b32.xlu0 %v755_v12, %s2446_s3 }
 0x65c   :  { %v748_v17 = vpop.permute.xlu1 %747 }
 0x65d   :  { %v750_v19 = vmul.f32 %v2187_v8, %v748_v17 }
 0x6c8   :  { %v647_v16 = vpop.permute.xlu0 %646 }
 0x6c9   :  { %v2758_v18 = vadd.f32 %v647_v16, %v639_v14 }
 0x6cb   :  { %2188 = vtanh.f32 %v2758_v18 }
 0x6cd   :  { %v758_v20 = vpop.permute.xlu0 %757 }
 0x6ce   :  { %v2761_v21 = vadd.f32 %v758_v20, %v750_v19 }
 0x6d0   :  { %2190 = vtanh.f32 %v2761_v21 }
 0x6d5   :  { %v2189_v24 = vpop.eup %2188 }
 0x6d6   :  { %652 = vrot.lane.b32.xlu1 %v2189_v24, %s2438_s20 }
 0x6da   :  { %v2191_v25 = vpop.eup %2190 }
 0x6db   :  { %763 = vrot.lane.b32.xlu0 %v2191_v25, %s2438_s20 }
 0x748   :  { %v653_v27 = vpop.permute.xlu1 %652 }
 0x749   :  { %v655_v28 = vmul.f32 %v2185_v5, %v653_v27 }
 0x74b   :  { %v773_v29 = vpack.c.bf16 %v655_v28, %v655_v28  ;;  %846 = vrot.lane.b32.xlu0 %v655_v28, %s2446_s3 }
 0x74d   :  { %v764_v30 = vpop.permute.xlu0 %763  ;;  %775 = vrot.lane.b32.xlu1 %v773_v29, %s2446_s3 }
 0x74e   :  { %v2768_v34 = vmul.f32 %v2187_v8, %v764_v30 }
 0x751   :  { %849 = vrot.lane.b32.xlu1 %v2768_v34, %s2438_s20 }
 0x7bd   :  { %v847_v38 = vpop.permute.xlu0 %846 }
 0x7bf   :  { %v776_v36 = vpop.permute.xlu1 %775 }
 0x7c0   :  { %2007 = vmatmul.mubr.msk.bf16.vlgmr.msra.gmra.mrb[20].mxu0 %vm165_vm0, %v776_v36 }
 0x7c1   :  { %2011 = vmatpush3.bf16.msra.mxu0 %v2699_v31  ;;  %2018 = vmatprep.mubr.msk.bf16.mxu0 %vm2445_vm2, %v2444_v23 }
 0x7c2   :  { %2012 = vmatprep.subr.bf16.mxu0 %v2444_v23 }
 0x7c3   :  { %v850_v37 = vpop.permute.xlu1 %849 }
 0x7c4   :  { %v852_v39 = vsel %vm165_vm0, %v847_v38, %v850_v37 }
 0x7c5   :  { %2013 = vmatpush3.bf16.msra.mxu0 %v2705_v32  ;;  %v853_v40 = vpack.c.bf16 %v852_v39, %v852_v39 }
 0x7c6   :  { %2014 = vmatprep.subr.bf16.mxu0 %v2444_v23 }
 0x7c9   :  { %2015 = vmatpush3.bf16.msra.mxu0 %v2712_v33 }
 0x7ca   :  { %2016 = vmatprep.subr.bf16.mxu0 %v2444_v23 }
 0x7cd   :  { %2017 = vmatpush3.bf16.msra.mxu0 %v2721_v35 }
 0x7ce   :  { %2042 = vmatprep.subr.bf16.mxu0 %v2444_v23 }
 0x7d0   :  { %2019 = vmatmul.mubr.msk.bf16.vlgmr.msra.gmra.mrb[24].mxu0 %vm282_vm1, %v853_v40 }
 0x7d1   :  { %2043 = vmatpush3.bf16.msra.mxu0 %v2639_v22  ;;  %2046 = vmatprep.mubr.msk.bf16.mxu0 %vm2445_vm2, %v2444_v23 }
 0x7d2   :  { %2044 = vmatprep.subr.bf16.mxu0 %v2444_v23 }
 0x7d5   :  { %2045 = vmatpush3.bf16.msra.mxu0 %v2650_v26 }
 0x7d6   :  { %2050 = vmatprep.subr.bf16.mxu0 %v2444_v23 }
 0x893   :  { %v814_v41 = vpop.f32.mrb[20].mxu0 }
 0x894   :  { %v820_v42 = vadd.f32 %v814_v41, %v2676_v0  ;;  %v2008_v43 = vpop.f32.mrb[21].mxu0 }
 0x895   :  { %v817_v44 = vpop.f32.mrb[22].mxu0 }
 0x896   :  { %2192 = vtanh.f32 %v820_v42  ;;  %v2009_v45 = vpop.f32.mrb[23].mxu0  ;;  %v1825_v54 = vmul.f32 -1.442695, %v820_v42 }
 0x8a0   :  { %v2193_v46 = vpop.eup %2192 }
 0x8a1   :  { %830 = vrot.lane.b32.xlu0 %v2193_v46, %s2438_s20 }
 0x8a3   :  { %v891_v47 = vpop.f32.mrb[24].mxu0 }
 0x8a4   :  { %v892_v48 = vadd.f32 %v2746_v52, %v891_v47  ;;  %v2020_v49 = vpop.f32.mrb[25].mxu0 }
 0x8a5   :  { %v894_v50 = vpop.f32.mrb[26].mxu0 }
 0x8a6   :  { %2194 = vtanh.f32 %v892_v48  ;;  %v2021_v51 = vpop.f32.mrb[27].mxu0  ;;  %v1827_v55 = vmul.f32 -1.442695, %v892_v48 }
 0x8a7   :  { %2196 = vpow2.f32 %v1825_v54 }
 0x8a8   :  { %2198 = vpow2.f32 %v1827_v55 }
 0x8b0   :  { %v2195_v53 = vpop.eup %2194 }
 0x8b1   :  { %906 = vrot.lane.b32.xlu1 %v2195_v53, %s2438_s20  ;;  %v2197_v0 = vpop.eup %2196 }
 0x8b2   :  { %v824_v56 = vadd.f32 1.0, %v2197_v0  ;;  %v2199_v57 = vpop.eup %2198 }
 0x8b3   :  { %v900_v61 = vadd.f32 1.0, %v2199_v57 }
 0x8b4   :  { %2200 = vrcp.f32 %v824_v56 }
 0x8b5   :  { %2202 = vrcp.f32 %v900_v61 }
 0x8be   :  { %v2201_v58 = vpop.eup %2200 }
 0x8bf   :  { %v2203_v62 = vpop.eup %2202  ;;  %v828_v2 = vmul.f32 %v2201_v58, %v2758_v18 }
 0x8c0   :  { %v904_v7 = vmul.f32 %v2203_v62, %v2761_v21 }
 0x913   :  { %v831_v59 = vpop.permute.xlu0 %830 }
 0x914   :  { %v833_v60 = vmul.f32 %v2201_v58, %v831_v59 }
 0x916   :  { %835 = vrot.lane.b32.xlu0 %v833_v60, %s2446_s3 }
 0x923   :  { %v907_v63 = vpop.permute.xlu1 %906 }
 0x924   :  { %v909_v1 = vmul.f32 %v2203_v62, %v907_v63 }
 0x926   :  { %911 = vrot.lane.b32.xlu1 %v909_v1, %s2446_s3 }
 0x988   :  { %v836_v3 = vpop.permute.xlu0 %835 }
 0x989   :  { %v2798_v5 = vadd.f32 %v836_v3, %v828_v2 }
 0x98b   :  { %2204 = vtanh.f32 %v2798_v5 }
 0x995   :  { %v2205_v6 = vpop.eup %2204 }
 0x996   :  { %841 = vrot.lane.b32.xlu0 %v2205_v6, %s2438_s20 }
 0x998   :  { %v912_v8 = vpop.permute.xlu1 %911 }
 0x999   :  { %v2803_v10 = vadd.f32 %v912_v8, %v904_v7 }
 0x99b   :  { %2206 = vtanh.f32 %v2803_v10 }
 0x9a5   :  { %v2207_v12 = vpop.eup %2206 }
 0x9a6   :  { %917 = vrot.lane.b32.xlu1 %v2207_v12, %s2438_s20 }
 0xa08   :  { %v842_v14 = vpop.permute.xlu0 %841 }
 0xa09   :  { %v844_v16 = vmul.f32 %v2201_v58, %v842_v14 }
 0xa0b   :  { %v927_v17 = vpack.c.bf16 %v844_v16, %v844_v16  ;;  %1000 = vrot.lane.b32.xlu1 %v844_v16, %s2446_s3 }
 0xa0d   :  { %929 = vrot.lane.b32.xlu0 %v927_v17, %s2446_s3 }
 0xa18   :  { %v918_v18 = vpop.permute.xlu1 %917 }
 0xa19   :  { %v2809_v19 = vmul.f32 %v2203_v62, %v918_v18 }
 0xa1b   :  { %1003 = vrot.lane.b32.xlu0 %v2809_v19, %s2438_s20 }
 0xa7d   :  { %v1001_v21 = vpop.permute.xlu1 %1000 }
 0xa7f   :  { %v930_v20 = vpop.permute.xlu0 %929 }
 0xa80   :  { %2027 = vmatmul.mubr.msk.bf16.vlgmr.msra.gmra.mrb[16].mxu1 %vm165_vm0, %v930_v20 }
 0xa81   :  { %2031 = vmatpush3.bf16.msra.mxu1 %v2699_v31  ;;  %2038 = vmatprep.mubr.msk.bf16.mxu1 %vm2445_vm2, %v2444_v23 }
 0xa82   :  { %2032 = vmatprep.subr.bf16.mxu1 %v2444_v23 }
 0xa85   :  { %2033 = vmatpush3.bf16.msra.mxu1 %v2705_v32 }
 0xa86   :  { %2034 = vmatprep.subr.bf16.mxu1 %v2444_v23 }
 0xa89   :  { %2035 = vmatpush3.bf16.msra.mxu1 %v2712_v33 }
 0xa8a   :  { %2036 = vmatprep.subr.bf16.mxu1 %v2444_v23 }
 0xa8d   :  { %v1004_v24 = vpop.permute.xlu0 %1003  ;;  %2037 = vmatpush3.bf16.msra.mxu1 %v2721_v35 }
 0xa8e   :  { %v1006_v25 = vsel %vm165_vm0, %v1001_v21, %v1004_v24  ;;  %2062 = vmatprep.subr.bf16.mxu1 %v2444_v23 }
 0xa8f   :  { %v1007_v27 = vpack.c.bf16 %v1006_v25, %v1006_v25 }
 0xa91   :  { %2039 = vmatmul.mubr.msk.bf16.vlgmr.msra.gmra.mrb[20].mxu1 %vm282_vm1, %v1007_v27 }
 0xa92   :  { %2063 = vmatpush3.bf16.msra.mxu1 %v2639_v22  ;;  %2066 = vmatprep.mubr.msk.bf16.mxu1 %vm2445_vm2, %v2444_v23 }
 0xa93   :  { %2064 = vmatprep.subr.bf16.mxu1 %v2444_v23 }
 0xa96   :  { %2065 = vmatpush3.bf16.msra.mxu1 %v2650_v26 }
 0xa97   :  { %2070 = vmatprep.subr.bf16.mxu1 %v2444_v23 }
 0xb53   :  { %v968_v28 = vpop.f32.mrb[16].mxu1 }
 0xb54   :  { %v974_v29 = vadd.f32 %v968_v28, %v2678_v4  ;;  %v2028_v30 = vpop.f32.mrb[17].mxu1 }
 0xb55   :  { %v971_v36 = vpop.f32.mrb[18].mxu1 }
 0xb56   :  { %2208 = vtanh.f32 %v974_v29  ;;  %v2029_v37 = vpop.f32.mrb[19].mxu1  ;;  %v1829_v45 = vmul.f32 -1.442695, %v974_v29 }
 0xb60   :  { %v2209_v38 = vpop.eup %2208 }
 0xb61   :  { %984 = vrot.lane.b32.xlu1 %v2209_v38, %s2438_s20 }
 0xb64   :  { %v1045_v39 = vpop.f32.mrb[20].mxu1 }
 0xb65   :  { %v1046_v40 = vadd.f32 %v2746_v52, %v1045_v39  ;;  %v2040_v41 = vpop.f32.mrb[21].mxu1 }
 0xb66   :  { %v1048_v42 = vpop.f32.mrb[22].mxu1 }
 0xb67   :  { %2210 = vtanh.f32 %v1046_v40  ;;  %v2041_v43 = vpop.f32.mrb[23].mxu1  ;;  %v1831_v47 = vmul.f32 -1.442695, %v1046_v40 }
 0xb68   :  { %2212 = vpow2.f32 %v1829_v45 }
 0xb71   :  { %v2211_v44 = vpop.eup %2210 }
 0xb72   :  { %1060 = vrot.lane.b32.xlu0 %v2211_v44, %s2438_s20  ;;  %v2213_v4 = vpop.eup %2212 }
 0xb73   :  { %v978_v46 = vadd.f32 1.0, %v2213_v4 }
 0xb75   :  { %2214 = vrcp.f32 %v978_v46 }
 0xb76   :  { %2216 = vpow2.f32 %v1831_v47 }
 0xb7f   :  { %v2215_v48 = vpop.eup %2214 }
 0xb80   :  { %v2217_v49 = vpop.eup %2216  ;;  %v982_v56 = vmul.f32 %v2215_v48, %v2798_v5 }
 0xb81   :  { %v1054_v53 = vadd.f32 1.0, %v2217_v49 }
 0xb83   :  { %2218 = vrcp.f32 %v1054_v53 }
 0xb8d   :  { %v2219_v54 = vpop.eup %2218 }
 0xb8e   :  { %v1058_v60 = vmul.f32 %v2219_v54, %v2803_v10 }
 0xbd3   :  { %v985_v50 = vpop.permute.xlu1 %984 }
 0xbd4   :  { %v987_v51 = vmul.f32 %v2215_v48, %v985_v50 }
 0xbd6   :  { %989 = vrot.lane.b32.xlu1 %v987_v51, %s2446_s3 }
 0xbe4   :  { %v1061_v0 = vpop.permute.xlu0 %1060 }
 0xbe5   :  { %v1063_v55 = vmul.f32 %v2219_v54, %v1061_v0 }
 0xbe7   :  { %1065 = vrot.lane.b32.xlu0 %v1063_v55, %s2446_s3 }
 0xc48   :  { %v990_v57 = vpop.permute.xlu1 %989 }
 0xc49   :  { %v2839_v58 = vadd.f32 %v990_v57, %v982_v56 }
 0xc4b   :  { %2220 = vtanh.f32 %v2839_v58 }
 0xc55   :  { %v2221_v59 = vpop.eup %2220 }
 0xc56   :  { %995 = vrot.lane.b32.xlu1 %v2221_v59, %s2438_s20 }
 0xc59   :  { %v1066_v61 = vpop.permute.xlu0 %1065 }
 0xc5a   :  { %v2844_v62 = vadd.f32 %v1066_v61, %v1058_v60 }
 0xc5c   :  { %2222 = vtanh.f32 %v2844_v62 }
 0xc66   :  { %v2223_v63 = vpop.eup %2222 }
 0xc67   :  { %1071 = vrot.lane.b32.xlu0 %v2223_v63, %s2438_s20 }
 0xcc8   :  { %v996_v1 = vpop.permute.xlu1 %995 }
 0xcc9   :  { %v998_v2 = vmul.f32 %v2215_v48, %v996_v1 }
 0xccb   :  { %v1081_v3 = vpack.c.bf16 %v998_v2, %v998_v2  ;;  %1154 = vrot.lane.b32.xlu0 %v998_v2, %s2446_s3 }
 0xccd   :  { %1083 = vrot.lane.b32.xlu1 %v1081_v3, %s2446_s3 }
 0xcd9   :  { %v1072_v5 = vpop.permute.xlu0 %1071 }
 0xcda   :  { %v2850_v6 = vmul.f32 %v2219_v54, %v1072_v5 }
 0xcdc   :  { %1157 = vrot.lane.b32.xlu1 %v2850_v6, %s2438_s20 }
 0xd3d   :  { %v1155_v8 = vpop.permute.xlu0 %1154 }
 0xd3f   :  { %v1084_v7 = vpop.permute.xlu1 %1083 }
 0xd40   :  { %2047 = vmatmul.mubr.msk.bf16.vlgmr.msra.gmra.mrb[28].mxu0 %vm165_vm0, %v1084_v7 }
 0xd41   :  { %2051 = vmatpush3.bf16.msra.mxu0 %v2699_v31  ;;  %2058 = vmatprep.mubr.msk.bf16.mxu0 %vm2445_vm2, %v2444_v23 }
 0xd42   :  { %2052 = vmatprep.subr.bf16.mxu0 %v2444_v23 }
 0xd45   :  { %2053 = vmatpush3.bf16.msra.mxu0 %v2705_v32 }
 0xd46   :  { %2054 = vmatprep.subr.bf16.mxu0 %v2444_v23 }
 0xd49   :  { %2055 = vmatpush3.bf16.msra.mxu0 %v2712_v33 }
 0xd4a   :  { %2056 = vmatprep.subr.bf16.mxu0 %v2444_v23 }
 0xd4d   :  { %2057 = vmatpush3.bf16.msra.mxu0 %v2721_v35 }
 0xd4e   :  { %v1158_v10 = vpop.permute.xlu1 %1157  ;;  %2082 = vmatprep.subr.bf16.mxu0 %v2444_v23 }
 0xd4f   :  { %v1160_v12 = vsel %vm165_vm0, %v1155_v8, %v1158_v10 }
 0xd50   :  { %v1161_v14 = vpack.c.bf16 %v1160_v12, %v1160_v12 }
 0xd52   :  { %2059 = vmatmul.mubr.msk.bf16.vlgmr.msra.gmra.mrb[32].mxu0 %vm282_vm1, %v1161_v14 }
 0xd53   :  { %2083 = vmatpush3.bf16.msra.mxu0 %v2639_v22  ;;  %2086 = vmatprep.mubr.msk.bf16.mxu0 %vm2445_vm2, %v2444_v23 }
 0xd54   :  { %2084 = vmatprep.subr.bf16.mxu0 %v2444_v23 }
 0xd57   :  { %2085 = vmatpush3.bf16.msra.mxu0 %v2650_v26 }
 0xd58   :  { %2090 = vmatprep.subr.bf16.mxu0 %v2444_v23 }
 0xe13   :  { %v1122_v16 = vpop.f32.mrb[28].mxu0 }
 0xe14   :  { %v1128_v17 = vadd.f32 %v1122_v16, %v2684_v11  ;;  %v2048_v18 = vpop.f32.mrb[29].mxu0 }
 0xe15   :  { %v1125_v20 = vpop.f32.mrb[30].mxu0 }
 0xe16   :  { %2224 = vtanh.f32 %v1128_v17  ;;  %v2049_v21 = vpop.f32.mrb[31].mxu0  ;;  %v1833_v37 = vmul.f32 -1.442695, %v1128_v17 }
 0xe20   :  { %v2225_v24 = vpop.eup %2224 }
 0xe21   :  { %1138 = vrot.lane.b32.xlu0 %v2225_v24, %s2438_s20 }
 0xe25   :  { %v1199_v25 = vpop.f32.mrb[32].mxu0 }
 0xe26   :  { %v1200_v27 = vadd.f32 %v2746_v52, %v1199_v25  ;;  %v2060_v28 = vpop.f32.mrb[33].mxu0 }
 0xe27   :  { %v1202_v29 = vpop.f32.mrb[34].mxu0 }
 0xe28   :  { %2226 = vtanh.f32 %v1200_v27  ;;  %v2061_v30 = vpop.f32.mrb[35].mxu0  ;;  %v1835_v39 = vmul.f32 -1.442695, %v1200_v27 }
 0xe29   :  { %2228 = vpow2.f32 %v1833_v37 }
 0xe32   :  { %v2227_v36 = vpop.eup %2226 }
 0xe33   :  { %1214 = vrot.lane.b32.xlu1 %v2227_v36, %s2438_s20  ;;  %v2229_v11 = vpop.eup %2228 }
 0xe34   :  { %v1132_v38 = vadd.f32 1.0, %v2229_v11 }
 0xe36   :  { %2230 = vrcp.f32 %v1132_v38 }
 0xe37   :  { %2232 = vpow2.f32 %v1835_v39 }
 0xe40   :  { %v2231_v40 = vpop.eup %2230 }
 0xe41   :  { %v2233_v42 = vpop.eup %2232  ;;  %v1136_v47 = vmul.f32 %v2231_v40, %v2839_v58 }
 0xe42   :  { %v1208_v44 = vadd.f32 1.0, %v2233_v42 }
 0xe44   :  { %2234 = vrcp.f32 %v1208_v44 }
 0xe4e   :  { %v2235_v45 = vpop.eup %2234 }
 0xe4f   :  { %v1212_v51 = vmul.f32 %v2235_v45, %v2844_v62 }
 0xe93   :  { %v1139_v41 = vpop.permute.xlu0 %1138 }
 0xe94   :  { %v1141_v43 = vmul.f32 %v2231_v40, %v1139_v41 }
 0xe96   :  { %1143 = vrot.lane.b32.xlu0 %v1141_v43, %s2446_s3 }
 0xea5   :  { %v1215_v4 = vpop.permute.xlu1 %1214 }
 0xea6   :  { %v1217_v46 = vmul.f32 %v2235_v45, %v1215_v4 }
 0xea8   :  { %1219 = vrot.lane.b32.xlu1 %v1217_v46, %s2446_s3 }
 0xf08   :  { %v1144_v48 = vpop.permute.xlu0 %1143 }
 0xf09   :  { %v2880_v49 = vadd.f32 %v1144_v48, %v1136_v47 }
 0xf0b   :  { %2236 = vtanh.f32 %v2880_v49 }
 0xf15   :  { %v2237_v50 = vpop.eup %2236 }
 0xf16   :  { %1149 = vrot.lane.b32.xlu0 %v2237_v50, %s2438_s20 }
 0xf1a   :  { %v1220_v53 = vpop.permute.xlu1 %1219 }
 0xf1b   :  { %v2885_v54 = vadd.f32 %v1220_v53, %v1212_v51 }
 0xf1d   :  { %2238 = vtanh.f32 %v2885_v54 }
 0xf27   :  { %v2239_v0 = vpop.eup %2238 }
 0xf28   :  { %1225 = vrot.lane.b32.xlu1 %v2239_v0, %s2438_s20 }
 0xf88   :  { %v1150_v55 = vpop.permute.xlu0 %1149 }
 0xf89   :  { %v1152_v56 = vmul.f32 %v2231_v40, %v1150_v55 }
 0xf8b   :  { %v1235_v57 = vpack.c.bf16 %v1152_v56, %v1152_v56  ;;  %1308 = vrot.lane.b32.xlu1 %v1152_v56, %s2446_s3 }
 0xf8d   :  { %1237 = vrot.lane.b32.xlu0 %v1235_v57, %s2446_s3 }
 0xf9a   :  { %v1226_v58 = vpop.permute.xlu1 %1225 }
 0xf9b   :  { %v2891_v59 = vmul.f32 %v2235_v45, %v1226_v58 }
 0xf9d   :  { %1311 = vrot.lane.b32.xlu0 %v2891_v59, %s2438_s20 }
 0xffd   :  { %v1309_v61 = vpop.permute.xlu1 %1308 }
 0xfff   :  { %v1238_v60 = vpop.permute.xlu0 %1237 }
0x1000   :  { %2067 = vmatmul.mubr.msk.bf16.vlgmr.msra.gmra.mrb[24].mxu1 %vm165_vm0, %v1238_v60 }
0x1001   :  { %2071 = vmatpush3.bf16.msra.mxu1 %v2699_v31  ;;  %2078 = vmatprep.mubr.msk.bf16.mxu1 %vm2445_vm2, %v2444_v23 }
0x1002   :  { %2072 = vmatprep.subr.bf16.mxu1 %v2444_v23 }
0x1005   :  { %2073 = vmatpush3.bf16.msra.mxu1 %v2705_v32 }
0x1006   :  { %2074 = vmatprep.subr.bf16.mxu1 %v2444_v23 }
0x1009   :  { %2075 = vmatpush3.bf16.msra.mxu1 %v2712_v33 }
0x100a   :  { %2076 = vmatprep.subr.bf16.mxu1 %v2444_v23 }
0x100d   :  { %2077 = vmatpush3.bf16.msra.mxu1 %v2721_v35 }
0x100e   :  { %2102 = vmatprep.subr.bf16.mxu1 %v2444_v23 }
0x100f   :  { %v1312_v62 = vpop.permute.xlu0 %1311 }
0x1010   :  { %v1314_v63 = vsel %vm165_vm0, %v1309_v61, %v1312_v62 }
0x1011   :  { %v1315_v1 = vpack.c.bf16 %v1314_v63, %v1314_v63 }
0x1013   :  { %2079 = vmatmul.mubr.msk.bf16.vlgmr.msra.gmra.mrb[28].mxu1 %vm282_vm1, %v1315_v1 }
0x1014   :  { %2103 = vmatpush3.bf16.msra.mxu1 %v2639_v22  ;;  %2106 = vmatprep.mubr.msk.bf16.mxu1 %vm2445_vm2, %v2444_v23 }
0x1015   :  { %2104 = vmatprep.subr.bf16.mxu1 %v2444_v23 }
0x1018   :  { %2105 = vmatpush3.bf16.msra.mxu1 %v2650_v26 }
0x1019   :  { %2110 = vmatprep.subr.bf16.mxu1 %v2444_v23 }
0x10d3   :  { %v1276_v2 = vpop.f32.mrb[24].mxu1 }
0x10d4   :  { %v1282_v3 = vadd.f32 %v1276_v2, %v2688_v15  ;;  %v2068_v5 = vpop.f32.mrb[25].mxu1 }
0x10d5   :  { %v1279_v7 = vpop.f32.mrb[26].mxu1 }
0x10d6   :  { %2240 = vtanh.f32 %v1282_v3  ;;  %v2069_v8 = vpop.f32.mrb[27].mxu1  ;;  %v1837_v18 = vmul.f32 -1.442695, %v1282_v3 }
0x10e0   :  { %v2241_v10 = vpop.eup %2240 }
0x10e1   :  { %1292 = vrot.lane.b32.xlu1 %v2241_v10, %s2438_s20 }
0x10e6   :  { %v1353_v22 = vpop.f32.mrb[28].mxu1 }
0x10e7   :  { %v1354_v12 = vadd.f32 %v2746_v52, %v1353_v22  ;;  %v2080_v14 = vpop.f32.mrb[29].mxu1 }
0x10e8   :  { %v1356_v16 = vpop.f32.mrb[30].mxu1 }
0x10e9   :  { %2242 = vtanh.f32 %v1354_v12  ;;  %v2081_v17 = vpop.f32.mrb[31].mxu1  ;;  %v1839_v21 = vmul.f32 -1.442695, %v1354_v12 }
0x10ea   :  { %2244 = vpow2.f32 %v1837_v18 }
0x10f3   :  { %v2243_v26 = vpop.eup %2242 }
0x10f4   :  { %1368 = vrot.lane.b32.xlu0 %v2243_v26, %s2438_s20  ;;  %v2245_v15 = vpop.eup %2244 }
0x10f5   :  { %v1286_v20 = vadd.f32 1.0, %v2245_v15 }
0x10f7   :  { %2246 = vrcp.f32 %v1286_v20 }
0x10f8   :  { %2248 = vpow2.f32 %v1839_v21 }
0x1101   :  { %v2247_v24 = vpop.eup %2246 }
0x1102   :  { %v2249_v28 = vpop.eup %2248  ;;  %v1290_v11 = vmul.f32 %v2247_v24, %v2880_v49 }
0x1103   :  { %v1362_v29 = vadd.f32 1.0, %v2249_v28 }
0x1105   :  { %2250 = vrcp.f32 %v1362_v29 }
0x110f   :  { %v2251_v30 = vpop.eup %2250 }
0x1110   :  { %v1366_v41 = vmul.f32 %v2251_v30, %v2885_v54 }
0x1153   :  { %v1293_v25 = vpop.permute.xlu1 %1292 }
0x1154   :  { %v1295_v27 = vmul.f32 %v2247_v24, %v1293_v25 }
0x1156   :  { %1297 = vrot.lane.b32.xlu1 %v1295_v27, %s2446_s3 }
0x1166   :  { %v1369_v36 = vpop.permute.xlu0 %1368 }
0x1167   :  { %v1371_v37 = vmul.f32 %v2251_v30, %v1369_v36 }
0x1169   :  { %1373 = vrot.lane.b32.xlu0 %v1371_v37, %s2446_s3 }
0x11c8   :  { %v1298_v38 = vpop.permute.xlu1 %1297 }
0x11c9   :  { %v2921_v39 = vadd.f32 %v1298_v38, %v1290_v11 }
0x11cb   :  { %2252 = vtanh.f32 %v2921_v39 }
0x11d5   :  { %v2253_v40 = vpop.eup %2252 }
0x11d6   :  { %1303 = vrot.lane.b32.xlu1 %v2253_v40, %s2438_s20 }
0x11db   :  { %v1374_v42 = vpop.permute.xlu0 %1373 }
0x11dc   :  { %v2926_v43 = vadd.f32 %v1374_v42, %v1366_v41 }
0x11de   :  { %2254 = vtanh.f32 %v2926_v43 }
0x11e8   :  { %v2255_v44 = vpop.eup %2254 }
0x11e9   :  { %1379 = vrot.lane.b32.xlu0 %v2255_v44, %s2438_s20 }
0x1248   :  { %v1304_v45 = vpop.permute.xlu1 %1303 }
0x1249   :  { %v1306_v4 = vmul.f32 %v2247_v24, %v1304_v45 }
0x124b   :  { %v1389_v46 = vpack.c.bf16 %v1306_v4, %v1306_v4  ;;  %1462 = vrot.lane.b32.xlu0 %v1306_v4, %s2446_s3 }
0x124d   :  { %1391 = vrot.lane.b32.xlu1 %v1389_v46, %s2446_s3 }
0x125b   :  { %v1380_v47 = vpop.permute.xlu0 %1379 }
0x125c   :  { %v2932_v48 = vmul.f32 %v2251_v30, %v1380_v47 }
0x125e   :  { %1465 = vrot.lane.b32.xlu1 %v2932_v48, %s2438_s20 }
0x12bd   :  { %v1463_v50 = vpop.permute.xlu0 %1462 }
0x12bf   :  { %v1392_v49 = vpop.permute.xlu1 %1391 }
0x12c0   :  { %2087 = vmatmul.mubr.msk.bf16.vlgmr.msra.gmra.mrb[36].mxu0 %vm165_vm0, %v1392_v49 }
0x12c1   :  { %2091 = vmatpush3.bf16.msra.mxu0 %v2699_v31  ;;  %2098 = vmatprep.mubr.msk.bf16.mxu0 %vm2445_vm2, %v2444_v23 }
0x12c2   :  { %2092 = vmatprep.subr.bf16.mxu0 %v2444_v23 }
0x12c5   :  { %2093 = vmatpush3.bf16.msra.mxu0 %v2705_v32 }
0x12c6   :  { %2094 = vmatprep.subr.bf16.mxu0 %v2444_v23 }
0x12c9   :  { %2095 = vmatpush3.bf16.msra.mxu0 %v2712_v33 }
0x12ca   :  { %2096 = vmatprep.subr.bf16.mxu0 %v2444_v23 }
0x12cd   :  { %2097 = vmatpush3.bf16.msra.mxu0 %v2721_v35 }
0x12ce   :  { %2122 = vmatprep.subr.bf16.mxu0 %v2444_v23 }
0x12d0   :  { %v1466_v51 = vpop.permute.xlu1 %1465 }
0x12d1   :  { %v1468_v53 = vsel %vm165_vm0, %v1463_v50, %v1466_v51 }
0x12d2   :  { %v1469_v54 = vpack.c.bf16 %v1468_v53, %v1468_v53 }
0x12d4   :  { %2099 = vmatmul.mubr.msk.bf16.vlgmr.msra.gmra.mrb[40].mxu0 %vm282_vm1, %v1469_v54 }
0x12d5   :  { %2123 = vmatpush3.bf16.msra.mxu0 %v2699_v31  ;;  %2130 = vmatprep.mubr.msk.bf16.mxu0 %vm2445_vm2, %v2444_v23 }
0x12d6   :  { %2124 = vmatprep.subr.bf16.mxu0 %v2444_v23 }
0x12d9   :  { %2125 = vmatpush3.bf16.msra.mxu0 %v2705_v32 }
0x12da   :  { %2126 = vmatprep.subr.bf16.mxu0 %v2444_v23 }
0x12dd   :  { %2127 = vmatpush3.bf16.msra.mxu0 %v2712_v33 }
0x12de   :  { %2128 = vmatprep.subr.bf16.mxu0 %v2444_v23 }
0x12e1   :  { %2129 = vmatpush3.bf16.msra.mxu0 %v2721_v35 }
0x1393   :  { %v1430_v0 = vpop.f32.mrb[36].mxu0 }
0x1394   :  { %v1436_v55 = vadd.f32 %v1430_v0, %v2682_v9  ;;  %v2088_v56 = vpop.f32.mrb[37].mxu0 }
0x1395   :  { %v1433_v57 = vpop.f32.mrb[38].mxu0 }
0x1396   :  { %2256 = vtanh.f32 %v1436_v55  ;;  %v2089_v58 = vpop.f32.mrb[39].mxu0  ;;  %v1841_v5 = vmul.f32 -1.442695, %v1436_v55 }
0x13a0   :  { %v2257_v60 = vpop.eup %2256 }
0x13a1   :  { %1446 = vrot.lane.b32.xlu0 %v2257_v60, %s2438_s20 }
0x13a7   :  { %v1507_v61 = vpop.f32.mrb[40].mxu0 }
0x13a8   :  { %v1508_v62 = vadd.f32 %v2746_v52, %v1507_v61  ;;  %v2100_v63 = vpop.f32.mrb[41].mxu0 }
0x13a9   :  { %v1510_v1 = vpop.f32.mrb[42].mxu0 }
0x13aa   :  { %2258 = vtanh.f32 %v1508_v62  ;;  %v2101_v2 = vpop.f32.mrb[43].mxu0  ;;  %v1843_v8 = vmul.f32 -1.442695, %v1508_v62 }
0x13ab   :  { %2260 = vpow2.f32 %v1841_v5 }
0x13b4   :  { %v2259_v3 = vpop.eup %2258 }
0x13b5   :  { %1522 = vrot.lane.b32.xlu1 %v2259_v3, %s2438_s20  ;;  %v2261_v9 = vpop.eup %2260 }
0x13b6   :  { %v1440_v7 = vadd.f32 1.0, %v2261_v9 }
0x13b8   :  { %2262 = vrcp.f32 %v1440_v7 }
0x13b9   :  { %2264 = vpow2.f32 %v1843_v8 }
0x13c2   :  { %v2263_v10 = vpop.eup %2262 }
0x13c3   :  { %v2265_v14 = vpop.eup %2264  ;;  %v1444_v15 = vmul.f32 %v2263_v10, %v2921_v39 }
0x13c4   :  { %v1516_v16 = vadd.f32 1.0, %v2265_v14 }
0x13c6   :  { %2266 = vrcp.f32 %v1516_v16 }
0x13d0   :  { %v2267_v17 = vpop.eup %2266 }
0x13d1   :  { %v1520_v25 = vmul.f32 %v2267_v17, %v2926_v43 }
0x1413   :  { %v1447_v22 = vpop.permute.xlu0 %1446 }
0x1414   :  { %v1449_v12 = vmul.f32 %v2263_v10, %v1447_v22 }
0x1416   :  { %1451 = vrot.lane.b32.xlu0 %v1449_v12, %s2446_s3 }
0x1427   :  { %v1523_v26 = vpop.permute.xlu1 %1522 }
0x1428   :  { %v1525_v18 = vmul.f32 %v2267_v17, %v1523_v26 }
0x142a   :  { %1527 = vrot.lane.b32.xlu1 %v1525_v18, %s2446_s3 }
0x1488   :  { %v1452_v20 = vpop.permute.xlu0 %1451 }
0x1489   :  { %v2965_v21 = vadd.f32 %v1452_v20, %v1444_v15 }
0x148b   :  { %2268 = vtanh.f32 %v2965_v21 }
0x1495   :  { %v2269_v24 = vpop.eup %2268 }
0x1496   :  { %1457 = vrot.lane.b32.xlu0 %v2269_v24, %s2438_s20 }
0x149c   :  { %v1528_v27 = vpop.permute.xlu1 %1527 }
0x149d   :  { %v2970_v28 = vadd.f32 %v1528_v27, %v1520_v25 }
0x149f   :  { %2270 = vtanh.f32 %v2970_v28 }
0x14a9   :  { %v2271_v29 = vpop.eup %2270 }
0x14aa   :  { %1533 = vrot.lane.b32.xlu1 %v2271_v29, %s2438_s20 }
0x1508   :  { %v1458_v30 = vpop.permute.xlu0 %1457 }
0x1509   :  { %v1460_v36 = vmul.f32 %v2263_v10, %v1458_v30 }
0x150b   :  { %v1543_v37 = vpack.c.bf16 %v1460_v36, %v1460_v36  ;;  %1616 = vrot.lane.b32.xlu1 %v1460_v36, %s2446_s3 }
0x150d   :  { %1545 = vrot.lane.b32.xlu0 %v1543_v37, %s2446_s3 }
0x151c   :  { %v1534_v11 = vpop.permute.xlu1 %1533 }
0x151d   :  { %v2976_v38 = vmul.f32 %v2267_v17, %v1534_v11 }
0x151f   :  { %1619 = vrot.lane.b32.xlu0 %v2976_v38, %s2438_s20 }
0x157d   :  { %v1617_v40 = vpop.permute.xlu1 %1616 }
0x157f   :  { %v1546_v39 = vpop.permute.xlu0 %1545 }
0x1580   :  { %2107 = vmatmul.mubr.msk.bf16.vlgmr.msra.gmra.mrb[32].mxu1 %vm165_vm0, %v1546_v39 }
0x1581   :  { %2111 = vmatpush3.bf16.msra.mxu1 %v2699_v31  ;;  %2118 = vmatprep.mubr.msk.bf16.mxu1 %vm2445_vm2, %v2444_v23 }
0x1582   :  { %2112 = vmatprep.subr.bf16.mxu1 %v2444_v23 }
0x1585   :  { %2113 = vmatpush3.bf16.msra.mxu1 %v2705_v32 }
0x1586   :  { %2114 = vmatprep.subr.bf16.mxu1 %v2444_v23 }
0x1589   :  { %2115 = vmatpush3.bf16.msra.mxu1 %v2712_v33 }
0x158a   :  { %2116 = vmatprep.subr.bf16.mxu1 %v2444_v23 }
0x158d   :  { %2117 = vmatpush3.bf16.msra.mxu1 %v2721_v35 }
0x1591   :  { %v1620_v41 = vpop.permute.xlu0 %1619 }
0x1592   :  { %v1622_v42 = vsel %vm165_vm0, %v1617_v40, %v1620_v41 }
0x1593   :  { %v1623_v31 = vpack.c.bf16 %v1622_v42, %v1622_v42 }
0x1595   :  { %2119 = vmatmul.mubr.msk.bf16.vlgmr.msra.gmra.mrb[36].mxu1 %vm282_vm1, %v1623_v31 }
0x1653   :  { %v1584_v43 = vpop.f32.mrb[32].mxu1 }
0x1654   :  { %v1590_v44 = vadd.f32 %v1584_v43, %v2686_v13  ;;  %v2108_v45 = vpop.f32.mrb[33].mxu1 }
0x1655   :  { %v1587_v32 = vpop.f32.mrb[34].mxu1 }
0x1656   :  { %2272 = vtanh.f32 %v1590_v44  ;;  %v2109_v4 = vpop.f32.mrb[35].mxu1  ;;  %v1845_v51 = vmul.f32 -1.442695, %v1590_v44 }
0x1660   :  { %v2273_v46 = vpop.eup %2272 }
0x1661   :  { %1600 = vrot.lane.b32.xlu1 %v2273_v46, %s2438_s20 }
0x1668   :  { %v1661_v23 = vpop.f32.mrb[36].mxu1 }
0x1669   :  { %v1662_v33 = vadd.f32 %v2746_v52, %v1661_v23  ;;  %v2120_v35 = vpop.f32.mrb[37].mxu1 }
0x166a   :  { %v1664_v47 = vpop.f32.mrb[38].mxu1 }
0x166b   :  { %2274 = vtanh.f32 %v1662_v33  ;;  %v2121_v49 = vpop.f32.mrb[39].mxu1  ;;  %v1847_v54 = vmul.f32 -1.442695, %v1662_v33 }
0x166c   :  { %2276 = vpow2.f32 %v1845_v51 }
0x1675   :  { %v2275_v50 = vpop.eup %2274 }
0x1676   :  { %1676 = vrot.lane.b32.xlu0 %v2275_v50, %s2438_s20  ;;  %v2277_v13 = vpop.eup %2276 }
0x1677   :  { %v1594_v53 = vadd.f32 1.0, %v2277_v13 }
0x1679   :  { %2278 = vrcp.f32 %v1594_v53 }
0x167a   :  { %2280 = vpow2.f32 %v1847_v54 }
0x1683   :  { %v2279_v0 = vpop.eup %2278 }
0x1684   :  { %v2281_v57 = vpop.eup %2280  ;;  %v1598_v63 = vmul.f32 %v2279_v0, %v2965_v21 }
0x1685   :  { %v1670_v58 = vadd.f32 1.0, %v2281_v57 }
0x1687   :  { %2282 = vrcp.f32 %v1670_v58 }
0x1691   :  { %v2283_v60 = vpop.eup %2282 }
0x1692   :  { %v1674_v5 = vmul.f32 %v2283_v60, %v2970_v28 }
0x16d3   :  { %v1601_v55 = vpop.permute.xlu1 %1600 }
0x16d4   :  { %v1603_v56 = vmul.f32 %v2279_v0, %v1601_v55 }
0x16d6   :  { %1605 = vrot.lane.b32.xlu1 %v1603_v56, %s2446_s3 }
0x16e8   :  { %v1677_v61 = vpop.permute.xlu0 %1676 }
0x16e9   :  { %v1679_v62 = vmul.f32 %v2283_v60, %v1677_v61 }
0x16eb   :  { %1681 = vrot.lane.b32.xlu0 %v1679_v62, %s2446_s3 }
0x1748   :  { %v1606_v1 = vpop.permute.xlu1 %1605 }
0x1749   :  { %v1608_v2 = vadd.f32 %v1606_v1, %v1598_v63 }
0x174b   :  { %2284 = vtanh.f32 %v1608_v2 }
0x1755   :  { %v2285_v3 = vpop.eup %2284 }
0x1756   :  { %1611 = vrot.lane.b32.xlu1 %v2285_v3, %s2438_s20 }
0x175d   :  { %v1682_v9 = vpop.permute.xlu0 %1681 }
0x175e   :  { %v1684_v7 = vadd.f32 %v1682_v9, %v1674_v5 }
0x1760   :  { %2286 = vtanh.f32 %v1684_v7 }
0x176a   :  { %v2287_v8 = vpop.eup %2286 }
0x176b   :  { %1687 = vrot.lane.b32.xlu0 %v2287_v8, %s2438_s20 }
0x17c8   :  { %v1612_v10 = vpop.permute.xlu1 %1611 }
0x17c9   :  { %v1614_v22 = vmul.f32 %v2279_v0, %v1612_v10 }
0x17cb   :  { %1697 = vrot.lane.b32.xlu1 %v1614_v22, %s2446_s3 }
0x17dd   :  { %v1688_v12 = vpop.permute.xlu0 %1687 }
0x17de   :  { %v1690_v14 = vmul.f32 %v2283_v60, %v1688_v12 }
0x17e0   :  { %1700 = vrot.lane.b32.xlu0 %v1690_v14, %s2438_s20 }
0x183d   :  { %v1698_v16 = vpop.permute.xlu1 %1697 }
0x1852   :  { %v1701_v17 = vpop.permute.xlu0 %1700 }
0x1853   :  { %v1703_v26 = vsel %vm165_vm0, %v1698_v16, %v1701_v17 }
0x1854   :  { %v1704_v18 = vpack.c.bf16 %v1703_v26, %v1703_v26 }
0x1856   :  { %2131 = vmatmul.mubr.msk.bf16.vlgmr.msra.gmra.mrb[44].mxu0 %vm282_vm1, %v1704_v18 }
0x1929   :  { %v1742_v15 = vpop.f32.mrb[44].mxu0 }
0x192a   :  { %v1743_v20 = vadd.f32 %v2746_v52, %v1742_v15  ;;  %v2132_v21 = vpop.f32.mrb[45].mxu0 }
0x192b   :  { %v1745_v24 = vpop.f32.mrb[46].mxu0 }
0x192c   :  { %2288 = vtanh.f32 %v1743_v20  ;;  %v2133_v25 = vpop.f32.mrb[47].mxu0  ;;  %v1849_v28 = vmul.f32 -1.442695, %v1743_v20 }
0x192e   :  { %2290 = vpow2.f32 %v1849_v28 }
0x1936   :  { %v2289_v27 = vpop.eup %2288 }
0x1937   :  { %1757 = vrot.lane.b32.xlu1 %v2289_v27, %s2438_s20 }
0x1938   :  { %v2291_v29 = vpop.eup %2290 }
0x1939   :  { %v1751_v30 = vadd.f32 1.0, %v2291_v29 }
0x193b   :  { %2292 = vrcp.f32 %v1751_v30 }
0x1945   :  { %v2293_v36 = vpop.eup %2292 }
0x1946   :  { %v1755_v52 = vmul.f32 %v2293_v36, %v1684_v7 }
0x19a9   :  { %v1758_v37 = vpop.permute.xlu1 %1757 }
0x19aa   :  { %v1760_v11 = vmul.f32 %v2293_v36, %v1758_v37 }
0x19ac   :  { %1762 = vrot.lane.b32.xlu0 %v1760_v11, %s2446_s3 }
0x19b0   :  { %768 = vrot.lane.b32.xlu0 %v2768_v34, %s2446_s3 }
0x19b4   :  { %1076 = vrot.lane.b32.xlu0 %v2850_v6, %s2446_s3 }
0x19b8   :  { %1384 = vrot.lane.b32.xlu0 %v2932_v48, %s2446_s3 }
0x19bc   :  { %1692 = vrot.lane.b32.xlu0 %v1690_v14, %s2446_s3 }
0x1a1e   :  { %v1763_v39 = vpop.permute.xlu0 %1762 }
0x1a1f   :  { %v1765_v40 = vadd.f32 %v1763_v39, %v1755_v52 }
0x1a21   :  { %2294 = vtanh.f32 %v1765_v40 }
0x1a22   :  { %v769_v41 = vpop.permute.xlu0 %768 }
0x1a23   :  { %771 = vst.msk [vmem:[%s3069_s13] sm:$0xff] %vm165_vm0, %v769_v41 }
0x1a26   :  { %v1077_v42 = vpop.permute.xlu0 %1076 }
0x1a27   :  { %1079 = vst.msk [vmem:[%s3069_s13 + $0x10] sm:$0xff] %vm165_vm0, %v1077_v42 }
0x1a2a   :  { %v1385_v34 = vpop.permute.xlu0 %1384 }
0x1a2b   :  { %v2295_v6 = vpop.eup %2294  ;;  %1387 = vst.msk [vmem:[%s3069_s13 + $0x20] sm:$0xff] %vm165_vm0, %v1385_v34 }
0x1a2c   :  { %1768 = vrot.lane.b32.xlu1 %v2295_v6, %s2438_s20 }
0x1a2e   :  { %v1693_v48 = vpop.permute.xlu0 %1692 }
0x1a2f   :  { %1695 = vst.msk [vmem:[%s3069_s13 + $0x30] sm:$0xff] %vm165_vm0, %v1693_v48 }
0x1a30   :  { %922 = vrot.lane.b32.xlu1 %v2809_v19, %s2446_s3 }
0x1a34   :  { %1230 = vrot.lane.b32.xlu1 %v2891_v59, %s2446_s3 }
0x1a38   :  { %1538 = vrot.lane.b32.xlu1 %v2976_v38, %s2446_s3 }
0x1a9e   :  { %v1769_v31 = vpop.permute.xlu1 %1768 }
0x1a9f   :  { %v1771_v43 = vmul.f32 %v2293_v36, %v1769_v31 }
0x1aa1   :  { %1773 = vrot.lane.b32.xlu1 %v1771_v43, %s2446_s3 }
0x1aa2   :  { %v923_v44 = vpop.permute.xlu1 %922 }
0x1aa3   :  { %925 = vst.msk [vmem:[%s3069_s13 + $0x8] sm:$0xff] %vm165_vm0, %v923_v44 }
0x1aa6   :  { %v1231_v45 = vpop.permute.xlu1 %1230 }
0x1aa7   :  { %1233 = vst.msk [vmem:[%s3069_s13 + $0x18] sm:$0xff] %vm165_vm0, %v1231_v45 }
0x1aaa   :  { %v1539_v19 = vpop.permute.xlu1 %1538 }
0x1aab   :  { %1541 = vst.msk [vmem:[%s3069_s13 + $0x28] sm:$0xff] %vm165_vm0, %v1539_v19 }
0x1b13   :  { %v1774_v59 = vpop.permute.xlu1 %1773 }
0x1b14   :  { %1776 = vst.msk [vmem:[%s3069_s13 + $0x38] sm:$0xff] %vm165_vm0, %v1774_v59 }
0x1b15   :  { %1781 = vsyncpa [#allocation4], 1 }
0x1b16   :  { %1782 = vsyncpa [#allocation6], 1 }
0x1b17   :  { %1783 = vsyncpa [#allocation9], 1 }
0x1b18   :  { %1784 = vsyncpa [#allocation12], 1 }

</bundles_post_ra>
